<compile_context>
chip_gen: v7x
topology: tpu7x:2x2x1
jax: 0.10.0
libtpu: 0.0.40
codegen_flags: <defaults>
</compile_context>

<pallas_src>
import math
import functools

import jax
import jax.numpy as jnp
from jax.experimental import pallas as pl

# ----------------------------- configuration -------------------------------
HIDDEN = 32            # transformer.d_model (divisible by 32 -> GroupNorm(32, hidden))
NUM_QUERIES = 4
NUM_CLASSES = 3
NUM_LEVELS = 3         # num_feature_levels
GN_GROUPS = 32
GN_EPS = 1e-5
STRIDES = (2, 4)       # synthetic backbone strides
NUM_CHANNELS = (8, 16) # synthetic backbone channel counts
IN_CH = 3
IMG = 16

# static per-level geometry
_BB_HW = tuple((IMG // s, IMG // s) for s in STRIDES)                  # (8,8), (4,4)
_EXTRA_HW = ((_BB_HW[-1][0] + 1) // 2, (_BB_HW[-1][1] + 1) // 2)       # (2,2)
ALL_HW = _BB_HW + (_EXTRA_HW,)
LEVEL_P = tuple(h * w for (h, w) in ALL_HW)                            # (64, 16, 4)
S_TOTAL = sum(LEVEL_P)                                                 # 84
PATCH_K = 9 * (IN_CH + 1)                                              # 36 (rgb + ones channel per tap)
K_TOT = IN_CH + IN_CH + PATCH_K + NUM_LEVELS                           # 45


# ----------------------------- fused Pallas kernel --------------------------
def _dtmil_fused_kernel(tok_ref, w_ref, seg_ref, gng_ref, gnb_ref,
                        pos_ref, mask_ref, qe_ref, clsw_ref, clsb_ref,
                        o_ref, *, batch):
    B = batch
    scale = 1.0 / math.sqrt(HIDDEN)

    # --- all levels' (pre-composed) conv input projections: ONE matmul -------
    # tok columns: [lvl0 rgb | lvl1 rgb | lvl2 3x3 patches (rgb+1) | one-hot lvl]
    # w rows     : [   w0    |    w1    |          w2             |  b0 b1 b2 ]
    w_b = jnp.broadcast_to(w_ref[...][None], (B, K_TOT, HIDDEN))
    y = jnp.einsum('bsk,bkc->bsc', tok_ref[...], w_b,
                   preferred_element_type=jnp.float32)                # (B, S, C)

    # --- GroupNorm(32, 32): one channel per group -> per-channel stats over --
    # each level's spatial positions of each sample (biased variance, torch
    # semantics), computed with segment masks so the levels stay in one slab.
    mem = pos_ref[...]                                                # pos added once
    for l in range(NUM_LEVELS):
        m_l = seg_ref[:, l:l + 1]                                     # (S, 1)
        inv_p = 1.0 / float(LEVEL_P[l])
        mean = jnp.sum(y * m_l, axis=1, keepdims=True) * inv_p        # (B, 1, C)
        d = y - mean
        var = jnp.sum(jnp.square(d) * m_l, axis=1, keepdims=True) * inv_p
        yn = d * jax.lax.rsqrt(var + GN_EPS)
        mem = mem + m_l * (yn * gng_ref[l:l + 1, :] + gnb_ref[l:l + 1, :])

    # --- transformer stand-in: dense masked cross-attention ------------------
    # TODO(synk): real module is multi-scale deformable attention (injected).
    qb = jnp.broadcast_to(qe_ref[...][None], (B, NUM_QUERIES, HIDDEN))
    s = jnp.einsum('bqd,bsd->bqs', qb, mem,
                   preferred_element_type=jnp.float32) * scale        # (B, Q, S)
    s = jnp.where(mask_ref[...] > 0.5, -1e9, s)                       # (B,1,S) bcast over Q
    s = s - jnp.max(s, axis=-1, keepdims=True)
    p = jnp.exp(s)
    p = p * pl.reciprocal(jnp.sum(p, axis=-1, keepdims=True), approx=True)
    hs = jnp.einsum('bqs,bsd->bqd', p, mem,
                    preferred_element_type=jnp.float32)               # (B, Q, HIDDEN)

    # --- class head: hs.view(B, -1) @ cls_w + cls_b (unrolled over queries, --
    # avoids an in-kernel (B,Q,D)->(B,Q*D) lane reshape) ----------------------
    acc = clsb_ref[...]                                               # (1, NUM_CLASSES)
    for q in range(NUM_QUERIES):
        acc = acc + jnp.dot(hs[:, q, :],
                            clsw_ref[q * HIDDEN:(q + 1) * HIDDEN, :],
                            preferred_element_type=jnp.float32)
    o_ref[...] = acc                                                  # (B, NUM_CLASSES)


# ----------------------------- plain-JAX glue --------------------------------
def nearest_mask(mask, h, w):
    """F.interpolate(mask, size=(h, w), mode='nearest') equivalent for bool masks."""
    B, H, W = mask.shape
    ri = (jnp.arange(h) * H) // h
    ci = (jnp.arange(w) * W) // w
    return mask[:, ri][:, :, ci]


def sine_pos_embed(mask, num_pos_feats, temperature=10000.0):
    """DETR-style PositionEmbeddingSine (backbone[1]); channels-last output."""
    B, H, W = mask.shape
    not_mask = (~mask).astype(jnp.float32)
    y_embed = jnp.cumsum(not_mask, axis=1)
    x_embed = jnp.cumsum(not_mask, axis=2)
    eps = 1e-6
    scale = 2.0 * math.pi
    y_embed = y_embed / (y_embed[:, -1:, :] + eps) * scale
    x_embed = x_embed / (x_embed[:, :, -1:] + eps) * scale
    dim_t = jnp.arange(num_pos_feats, dtype=jnp.float32)
    dim_t = temperature ** (2.0 * jnp.floor(dim_t / 2.0) / num_pos_feats)
    pos_x = x_embed[..., None] / dim_t
    pos_y = y_embed[..., None] / dim_t
    pos_x = jnp.stack((jnp.sin(pos_x[..., 0::2]), jnp.cos(pos_x[..., 1::2])),
                      axis=4).reshape(B, H, W, -1)
    pos_y = jnp.stack((jnp.sin(pos_y[..., 0::2]), jnp.cos(pos_y[..., 1::2])),
                      axis=4).reshape(B, H, W, -1)
    return jnp.concatenate((pos_y, pos_x), axis=3)  # (B, H, W, 2*num_pos_feats)


def im2col_3x3_s2_p1(x):
    """x: (B, H, W, C) -> patches (B, Ho*Wo, 9*C) for a 3x3 stride-2 pad-1 conv."""
    B, H, W, C = x.shape
    Ho, Wo = (H + 1) // 2, (W + 1) // 2
    xp = jnp.pad(x, ((0, 0), (1, 1), (1, 1), (0, 0)))
    patches = []
    for kh in range(3):
        for kw in range(3):
            patches.append(
                xp[:, kh: kh + 2 * (Ho - 1) + 1: 2, kw: kw + 2 * (Wo - 1) + 1: 2, :])
    p = jnp.stack(patches, axis=3)            # (B, Ho, Wo, 9, C), (kh, kw) order
    return p.reshape(B, Ho * Wo, 9 * C), (Ho, Wo)


def _compose_and_pack(params, samples_tensor, samples_mask):
    """Layout plumbing (plain JAX): pooled tokens, im2col patches, pos embeds,
    masks, and the pre-composed block-structured projection weight."""
    B = samples_tensor.shape[0]
    x = samples_tensor.transpose(0, 2, 3, 1)                 # NHWC (B, H, W, 3)

    # synthetic backbone "features" = avg-pooled raw tokens; its 1x1 channel
    # projection is pre-composed into the input_proj weights below.
    toks, masks, poss = [], [], []
    for l, st in enumerate(STRIDES):
        Hh, Wh = ALL_HW[l]
        pooled = x.reshape(B, Hh, st, Wh, st, IN_CH).mean(axis=(2, 4))
        toks.append(pooled.reshape(B, Hh * Wh, IN_CH))
        ml = nearest_mask(samples_mask, Hh, Wh)
        masks.append(ml)
        poss.append(sine_pos_embed(ml, HIDDEN // 2).reshape(B, Hh * Wh, HIDDEN))

    # extra level: 3x3 s2 p1 conv over the (zero-padded) backbone level-1
    # feature map, expressed on augmented raw tokens: the appended ones channel
    # makes the composed conv reproduce feature-map zero padding exactly.
    Hh2, Wh2 = ALL_HW[2]
    pooled1 = toks[1].reshape(B, ALL_HW[1][0], ALL_HW[1][1], IN_CH)
    x_aug = jnp.concatenate([pooled1, jnp.ones_like(pooled1[..., :1])], axis=-1)
    patch2, _ = im2col_3x3_s2_p1(x_aug)                      # (B, 4, 36)
    ml2 = nearest_mask(samples_mask, Hh2, Wh2)
    masks.append(ml2)
    poss.append(sine_pos_embed(ml2, HIDDEN // 2).reshape(B, Hh2 * Wh2, HIDDEN))

    # pre-composed per-level projection weights / biases
    w0 = params["bb_w"][0] @ params["proj_w"][0]
    b0 = params["bb_b"][0] @ params["proj_w"][0] + params["proj_b"][0]
    w1 = params["bb_w"][1] @ params["proj_w"][1]
    b1 = params["bb_b"][1] @ params["proj_w"][1] + params["proj_b"][1]
    w_aug = jnp.concatenate([params["bb_w"][1], params["bb_b"][1][None, :]], axis=0)  # (4,16)
    pw2 = params["proj_w"][2].reshape(9, NUM_CHANNELS[-1], HIDDEN)
    w2 = jnp.einsum('ac,kcd->kad', w_aug, pw2).reshape(PATCH_K, HIDDEN)
    b2 = params["proj_b"][2]
    w_all = jnp.concatenate([w0, w1, w2, b0[None], b1[None], b2[None]], axis=0)  # (45, 32)

    # block-structured token matrix (zero columns -> per-level weight blocks,
    # one-hot indicator columns -> per-level bias rows)
    eye = jnp.eye(NUM_LEVELS, dtype=jnp.float32)

    def pack(level, body, p):
        cols = [jnp.zeros((B, p, IN_CH), jnp.float32),
                jnp.zeros((B, p, IN_CH), jnp.float32),
                jnp.zeros((B, p, PATCH_K), jnp.float32)]
        cols[level] = body
        cols.append(jnp.broadcast_to(eye[level], (B, p, NUM_LEVELS)))
        return jnp.concatenate(cols, axis=-1)

    tok_all = jnp.concatenate(
        [pack(0, toks[0], LEVEL_P[0]),
         pack(1, toks[1], LEVEL_P[1]),
         pack(2, patch2, LEVEL_P[2])], axis=1)               # (B, S, 45)

    seg = jnp.concatenate(
        [jnp.broadcast_to(eye[l], (LEVEL_P[l], NUM_LEVELS)) for l in range(NUM_LEVELS)],
        axis=0)                                              # (S, 3)
    pos_all = jnp.concatenate(poss, axis=1)                  # (B, S, HIDDEN)
    mask_all = jnp.concatenate(
        [m.reshape(B, -1).astype(jnp.float32) for m in masks], axis=1)[:, None, :]  # (B,1,S)
    gng = jnp.stack(params["gn_g"], axis=0)                  # (3, HIDDEN)
    gnb = jnp.stack(params["gn_b"], axis=0)
    return tok_all, w_all, seg, gng, gnb, pos_all, mask_all


# ----------------------------- parameter init -------------------------------
def _xavier_uniform(key, shape, fan_in, fan_out):
    a = math.sqrt(6.0 / (fan_in + fan_out))
    return jax.random.uniform(key, shape, jnp.float32, -a, a)


def init_params(key):
    ks = list(jax.random.split(key, 12))
    p = {}

    # synthetic backbone: per-level 1x1 channel projection (3 -> num_channels[l])
    p["bb_w"] = [
        _xavier_uniform(ks[l], (IN_CH, NUM_CHANNELS[l]), IN_CH, NUM_CHANNELS[l])
        for l in range(len(STRIDES))
    ]
    p["bb_b"] = [jnp.zeros((c,), jnp.float32) for c in NUM_CHANNELS]

    # input_proj: levels 0..num_backbone_outs-1 = 1x1 conv, extra levels = 3x3 s2 conv
    proj_w, proj_b, gn_g, gn_b = [], [], [], []
    for l in range(NUM_LEVELS):
        if l < len(NUM_CHANNELS):
            cin, kk = NUM_CHANNELS[l], 1
        else:
            cin, kk = NUM_CHANNELS[-1], 3
        fan_in, fan_out = cin * kk * kk, HIDDEN * kk * kk
        proj_w.append(_xavier_uniform(ks[3 + l], (kk * kk * cin, HIDDEN), fan_in, fan_out))
        proj_b.append(jnp.zeros((HIDDEN,), jnp.float32))
        gn_g.append(jnp.ones((HIDDEN,), jnp.float32))
        gn_b.append(jnp.zeros((HIDDEN,), jnp.float32))
    p["proj_w"], p["proj_b"], p["gn_g"], p["gn_b"] = proj_w, proj_b, gn_g, gn_b

    # query_embed = nn.Embedding(num_queries, hidden), default N(0, 1)
    p["query_embed"] = jax.random.normal(ks[8], (NUM_QUERIES, HIDDEN), jnp.float32)

    # class_embed = nn.Linear(hidden*num_queries, num_classes); bias = -log((1-p)/p)
    fan_in = HIDDEN * NUM_QUERIES
    bound = 1.0 / math.sqrt(fan_in)
    p["cls_w"] = jax.random.uniform(ks[9], (fan_in, NUM_CLASSES), jnp.float32, -bound, bound)
    prior_prob = 0.01
    bias_value = -math.log((1 - prior_prob) / prior_prob)
    p["cls_b"] = jnp.full((NUM_CLASSES,), bias_value, jnp.float32)
    return p


# ----------------------------- forward pass ----------------------------------
def dt_mil_forward(params, samples_tensor, samples_mask):
    """samples_tensor: (B, 3, H, W) NCHW; samples_mask: (B, H, W) bool (True=pad).
    Returns pred_logits of shape (B, num_classes)."""
    B = samples_tensor.shape[0]
    tok_all, w_all, seg, gng, gnb, pos_all, mask_all = _compose_and_pack(
        params, samples_tensor, samples_mask)

    flops = 2 * B * (S_TOTAL * K_TOT * HIDDEN
                     + 2 * NUM_QUERIES * S_TOTAL * HIDDEN
                     + NUM_QUERIES * HIDDEN * NUM_CLASSES)
    bytes_accessed = 4 * (B * S_TOTAL * K_TOT + K_TOT * HIDDEN
                          + S_TOTAL * NUM_LEVELS + 2 * NUM_LEVELS * HIDDEN
                          + B * S_TOTAL * HIDDEN + B * S_TOTAL
                          + NUM_QUERIES * HIDDEN
                          + NUM_QUERIES * HIDDEN * NUM_CLASSES
                          + NUM_CLASSES + B * NUM_CLASSES)

    kern = functools.partial(_dtmil_fused_kernel, batch=B)
    logits = pl.pallas_call(
        kern,
        out_shape=jax.ShapeDtypeStruct((B, NUM_CLASSES), jnp.float32),
        cost_estimate=pl.CostEstimate(
            flops=flops,
            transcendentals=B * NUM_QUERIES * (S_TOTAL + 1) + NUM_LEVELS * B * HIDDEN,
            bytes_accessed=bytes_accessed),
    )(tok_all, w_all, seg, gng, gnb, pos_all, mask_all,
      params["query_embed"], params["cls_w"],
      params["cls_b"].reshape(1, NUM_CLASSES))
    return logits                                            # pred_logits


# ----------------------------- demo -----------------------------------------
if __name__ == "__main__":
    key = jax.random.PRNGKey(0)
    pkey, xkey = jax.random.split(key)
    params = init_params(pkey)

    samples_tensor = jax.random.normal(xkey, (2, IN_CH, IMG, IMG), jnp.float32)  # NCHW
    samples_mask = jnp.zeros((2, IMG, IMG), dtype=bool)                           # no padding

    fwd = jax.jit(dt_mil_forward)
    logits = jax.block_until_ready(fwd(params, samples_tensor, samples_mask))

    assert logits.shape == (2, NUM_CLASSES), logits.shape
    assert bool(jnp.all(jnp.isfinite(logits)))
    print("KERNEL_OK")
</pallas_src>

<mosaic_0001>
module attributes {stable_mosaic.version = 11 : i64} {
  func.func @_dtmil_fused_kernel(%arg0: memref<2x84x45xf32, #tpu.memory_space<vmem>>, %arg1: memref<45x32xf32, #tpu.memory_space<vmem>>, %arg2: memref<84x3xf32, #tpu.memory_space<vmem>>, %arg3: memref<3x32xf32, #tpu.memory_space<vmem>>, %arg4: memref<3x32xf32, #tpu.memory_space<vmem>>, %arg5: memref<2x84x32xf32, #tpu.memory_space<vmem>>, %arg6: memref<2x1x84xf32, #tpu.memory_space<vmem>>, %arg7: memref<4x32xf32, #tpu.memory_space<vmem>>, %arg8: memref<128x3xf32, #tpu.memory_space<vmem>>, %arg9: memref<1x3xf32, #tpu.memory_space<vmem>>, %arg10: memref<2x3xf32, #tpu.memory_space<vmem>>) attributes {dimension_semantics = [], scalar_prefetch = 0 : i64, scratch_operands = 0 : i64, tpu.core_type = #tpu.core_type<tc>} {
    %c0 = arith.constant 0 : index
    %c0_0 = arith.constant 0 : index
    %0 = vector.load %arg1[%c0, %c0_0] : memref<45x32xf32, #tpu.memory_space<vmem>>, vector<45x32xf32>
    %1 = vector.shape_cast %0 : vector<45x32xf32> to vector<1x45x32xf32>
    %2 = vector.shape_cast %1 : vector<1x45x32xf32> to vector<1x45x32xf32>
    %3 = vector.broadcast %2 : vector<1x45x32xf32> to vector<2x45x32xf32>
    %c0_1 = arith.constant 0 : index
    %c0_2 = arith.constant 0 : index
    %c0_3 = arith.constant 0 : index
    %4 = vector.load %arg0[%c0_1, %c0_2, %c0_3] : memref<2x84x45xf32, #tpu.memory_space<vmem>>, vector<2x84x45xf32>
    "tpu.trace_start"() <{level = 10 : i32, message = "bsk,bkc->bsc"}> : () -> ()
    %cst = arith.constant dense<0.000000e+00> : vector<2x84x32xf32>
    %5 = tpu.matmul %4, %3, %cst {dimension_numbers = #tpu.dot_dimension_numbers<[2], [1], [1], [2], [0, 0, 0, 1, 1, 2], [0], [0]>} : vector<2x84x45xf32>, vector<2x45x32xf32>, vector<2x84x32xf32> -> vector<2x84x32xf32>
    "tpu.trace_stop"() : () -> ()
    %c0_4 = arith.constant 0 : index
    %c0_5 = arith.constant 0 : index
    %c0_6 = arith.constant 0 : index
    %6 = vector.load %arg5[%c0_4, %c0_5, %c0_6] : memref<2x84x32xf32, #tpu.memory_space<vmem>>, vector<2x84x32xf32>
    %c0_7 = arith.constant 0 : index
    %c0_8 = arith.constant 0 : index
    %7 = vector.load %arg2[%c0_7, %c0_8] : memref<84x3xf32, #tpu.memory_space<vmem>>, vector<84x1xf32>
    %8 = vector.shape_cast %7 : vector<84x1xf32> to vector<1x84x1xf32>
    %9 = vector.broadcast %8 : vector<1x84x1xf32> to vector<2x84x32xf32>
    %10 = arith.mulf %5, %9 : vector<2x84x32xf32>
    %cst_9 = arith.constant dense<0.000000e+00> : vector<2x32xf32>
    %11 = vector.multi_reduction <add>, %10, %cst_9 [1] : vector<2x84x32xf32> to vector<2x32xf32>
    %12 = vector.shape_cast %11 : vector<2x32xf32> to vector<2x1x32xf32>
    %cst_10 = arith.constant 1.562500e-02 : f32
    %13 = vector.broadcast %cst_10 : f32 to vector<2x1x32xf32>
    %14 = arith.mulf %12, %13 : vector<2x1x32xf32>
    %15 = vector.broadcast %14 : vector<2x1x32xf32> to vector<2x84x32xf32>
    %16 = arith.subf %5, %15 : vector<2x84x32xf32>
    %17 = arith.mulf %16, %16 : vector<2x84x32xf32>
    %18 = vector.shape_cast %7 : vector<84x1xf32> to vector<1x84x1xf32>
    %19 = vector.broadcast %18 : vector<1x84x1xf32> to vector<2x84x32xf32>
    %20 = arith.mulf %17, %19 : vector<2x84x32xf32>
    %cst_11 = arith.constant dense<0.000000e+00> : vector<2x32xf32>
    %21 = vector.multi_reduction <add>, %20, %cst_11 [1] : vector<2x84x32xf32> to vector<2x32xf32>
    %22 = vector.shape_cast %21 : vector<2x32xf32> to vector<2x1x32xf32>
    %cst_12 = arith.constant 1.562500e-02 : f32
    %23 = vector.broadcast %cst_12 : f32 to vector<2x1x32xf32>
    %24 = arith.mulf %22, %23 : vector<2x1x32xf32>
    %cst_13 = arith.constant 9.99999974E-6 : f32
    %25 = vector.broadcast %cst_13 : f32 to vector<2x1x32xf32>
    %26 = arith.addf %24, %25 : vector<2x1x32xf32>
    %27 = math.rsqrt %26 : vector<2x1x32xf32>
    %28 = vector.broadcast %27 : vector<2x1x32xf32> to vector<2x84x32xf32>
    %29 = arith.mulf %16, %28 : vector<2x84x32xf32>
    %c0_14 = arith.constant 0 : index
    %c0_15 = arith.constant 0 : index
    %30 = vector.load %arg3[%c0_14, %c0_15] : memref<3x32xf32, #tpu.memory_space<vmem>>, vector<1x32xf32>
    %31 = vector.shape_cast %30 : vector<1x32xf32> to vector<1x1x32xf32>
    %32 = vector.broadcast %31 : vector<1x1x32xf32> to vector<2x84x32xf32>
    %33 = arith.mulf %29, %32 : vector<2x84x32xf32>
    %c0_16 = arith.constant 0 : index
    %c0_17 = arith.constant 0 : index
    %34 = vector.load %arg4[%c0_16, %c0_17] : memref<3x32xf32, #tpu.memory_space<vmem>>, vector<1x32xf32>
    %35 = vector.shape_cast %34 : vector<1x32xf32> to vector<1x1x32xf32>
    %36 = vector.broadcast %35 : vector<1x1x32xf32> to vector<2x84x32xf32>
    %37 = arith.addf %33, %36 : vector<2x84x32xf32>
    %38 = vector.shape_cast %7 : vector<84x1xf32> to vector<1x84x1xf32>
    %39 = vector.broadcast %38 : vector<1x84x1xf32> to vector<2x84x32xf32>
    %40 = arith.mulf %39, %37 : vector<2x84x32xf32>
    %41 = arith.addf %6, %40 : vector<2x84x32xf32>
    %c0_18 = arith.constant 0 : index
    %c1 = arith.constant 1 : index
    %42 = vector.load %arg2[%c0_18, %c1] : memref<84x3xf32, #tpu.memory_space<vmem>>, vector<84x1xf32>
    %43 = vector.shape_cast %42 : vector<84x1xf32> to vector<1x84x1xf32>
    %44 = vector.broadcast %43 : vector<1x84x1xf32> to vector<2x84x32xf32>
    %45 = arith.mulf %5, %44 : vector<2x84x32xf32>
    %cst_19 = arith.constant dense<0.000000e+00> : vector<2x32xf32>
    %46 = vector.multi_reduction <add>, %45, %cst_19 [1] : vector<2x84x32xf32> to vector<2x32xf32>
    %47 = vector.shape_cast %46 : vector<2x32xf32> to vector<2x1x32xf32>
    %cst_20 = arith.constant 6.250000e-02 : f32
    %48 = vector.broadcast %cst_20 : f32 to vector<2x1x32xf32>
    %49 = arith.mulf %47, %48 : vector<2x1x32xf32>
    %50 = vector.broadcast %49 : vector<2x1x32xf32> to vector<2x84x32xf32>
    %51 = arith.subf %5, %50 : vector<2x84x32xf32>
    %52 = arith.mulf %51, %51 : vector<2x84x32xf32>
    %53 = vector.shape_cast %42 : vector<84x1xf32> to vector<1x84x1xf32>
    %54 = vector.broadcast %53 : vector<1x84x1xf32> to vector<2x84x32xf32>
    %55 = arith.mulf %52, %54 : vector<2x84x32xf32>
    %cst_21 = arith.constant dense<0.000000e+00> : vector<2x32xf32>
    %56 = vector.multi_reduction <add>, %55, %cst_21 [1] : vector<2x84x32xf32> to vector<2x32xf32>
    %57 = vector.shape_cast %56 : vector<2x32xf32> to vector<2x1x32xf32>
    %cst_22 = arith.constant 6.250000e-02 : f32
    %58 = vector.broadcast %cst_22 : f32 to vector<2x1x32xf32>
    %59 = arith.mulf %57, %58 : vector<2x1x32xf32>
    %cst_23 = arith.constant 9.99999974E-6 : f32
    %60 = vector.broadcast %cst_23 : f32 to vector<2x1x32xf32>
    %61 = arith.addf %59, %60 : vector<2x1x32xf32>
    %62 = math.rsqrt %61 : vector<2x1x32xf32>
    %63 = vector.broadcast %62 : vector<2x1x32xf32> to vector<2x84x32xf32>
    %64 = arith.mulf %51, %63 : vector<2x84x32xf32>
    %c1_24 = arith.constant 1 : index
    %c0_25 = arith.constant 0 : index
    %65 = vector.load %arg3[%c1_24, %c0_25] : memref<3x32xf32, #tpu.memory_space<vmem>>, vector<1x32xf32>
    %66 = vector.shape_cast %65 : vector<1x32xf32> to vector<1x1x32xf32>
    %67 = vector.broadcast %66 : vector<1x1x32xf32> to vector<2x84x32xf32>
    %68 = arith.mulf %64, %67 : vector<2x84x32xf32>
    %c1_26 = arith.constant 1 : index
    %c0_27 = arith.constant 0 : index
    %69 = vector.load %arg4[%c1_26, %c0_27] : memref<3x32xf32, #tpu.memory_space<vmem>>, vector<1x32xf32>
    %70 = vector.shape_cast %69 : vector<1x32xf32> to vector<1x1x32xf32>
    %71 = vector.broadcast %70 : vector<1x1x32xf32> to vector<2x84x32xf32>
    %72 = arith.addf %68, %71 : vector<2x84x32xf32>
    %73 = vector.shape_cast %42 : vector<84x1xf32> to vector<1x84x1xf32>
    %74 = vector.broadcast %73 : vector<1x84x1xf32> to vector<2x84x32xf32>
    %75 = arith.mulf %74, %72 : vector<2x84x32xf32>
    %76 = arith.addf %41, %75 : vector<2x84x32xf32>
    %c0_28 = arith.constant 0 : index
    %c2 = arith.constant 2 : index
    %77 = vector.load %arg2[%c0_28, %c2] : memref<84x3xf32, #tpu.memory_space<vmem>>, vector<84x1xf32>
    %78 = vector.shape_cast %77 : vector<84x1xf32> to vector<1x84x1xf32>
    %79 = vector.broadcast %78 : vector<1x84x1xf32> to vector<2x84x32xf32>
    %80 = arith.mulf %5, %79 : vector<2x84x32xf32>
    %cst_29 = arith.constant dense<0.000000e+00> : vector<2x32xf32>
    %81 = vector.multi_reduction <add>, %80, %cst_29 [1] : vector<2x84x32xf32> to vector<2x32xf32>
    %82 = vector.shape_cast %81 : vector<2x32xf32> to vector<2x1x32xf32>
    %cst_30 = arith.constant 2.500000e-01 : f32
    %83 = vector.broadcast %cst_30 : f32 to vector<2x1x32xf32>
    %84 = arith.mulf %82, %83 : vector<2x1x32xf32>
    %85 = vector.broadcast %84 : vector<2x1x32xf32> to vector<2x84x32xf32>
    %86 = arith.subf %5, %85 : vector<2x84x32xf32>
    %87 = arith.mulf %86, %86 : vector<2x84x32xf32>
    %88 = vector.shape_cast %77 : vector<84x1xf32> to vector<1x84x1xf32>
    %89 = vector.broadcast %88 : vector<1x84x1xf32> to vector<2x84x32xf32>
    %90 = arith.mulf %87, %89 : vector<2x84x32xf32>
    %cst_31 = arith.constant dense<0.000000e+00> : vector<2x32xf32>
    %91 = vector.multi_reduction <add>, %90, %cst_31 [1] : vector<2x84x32xf32> to vector<2x32xf32>
    %92 = vector.shape_cast %91 : vector<2x32xf32> to vector<2x1x32xf32>
    %cst_32 = arith.constant 2.500000e-01 : f32
    %93 = vector.broadcast %cst_32 : f32 to vector<2x1x32xf32>
    %94 = arith.mulf %92, %93 : vector<2x1x32xf32>
    %cst_33 = arith.constant 9.99999974E-6 : f32
    %95 = vector.broadcast %cst_33 : f32 to vector<2x1x32xf32>
    %96 = arith.addf %94, %95 : vector<2x1x32xf32>
    %97 = math.rsqrt %96 : vector<2x1x32xf32>
    %98 = vector.broadcast %97 : vector<2x1x32xf32> to vector<2x84x32xf32>
    %99 = arith.mulf %86, %98 : vector<2x84x32xf32>
    %c2_34 = arith.constant 2 : index
    %c0_35 = arith.constant 0 : index
    %100 = vector.load %arg3[%c2_34, %c0_35] : memref<3x32xf32, #tpu.memory_space<vmem>>, vector<1x32xf32>
    %101 = vector.shape_cast %100 : vector<1x32xf32> to vector<1x1x32xf32>
    %102 = vector.broadcast %101 : vector<1x1x32xf32> to vector<2x84x32xf32>
    %103 = arith.mulf %99, %102 : vector<2x84x32xf32>
    %c2_36 = arith.constant 2 : index
    %c0_37 = arith.constant 0 : index
    %104 = vector.load %arg4[%c2_36, %c0_37] : memref<3x32xf32, #tpu.memory_space<vmem>>, vector<1x32xf32>
    %105 = vector.shape_cast %104 : vector<1x32xf32> to vector<1x1x32xf32>
    %106 = vector.broadcast %105 : vector<1x1x32xf32> to vector<2x84x32xf32>
    %107 = arith.addf %103, %106 : vector<2x84x32xf32>
    %108 = vector.shape_cast %77 : vector<84x1xf32> to vector<1x84x1xf32>
    %109 = vector.broadcast %108 : vector<1x84x1xf32> to vector<2x84x32xf32>
    %110 = arith.mulf %109, %107 : vector<2x84x32xf32>
    %111 = arith.addf %76, %110 : vector<2x84x32xf32>
    %c0_38 = arith.constant 0 : index
    %c0_39 = arith.constant 0 : index
    %112 = vector.load %arg7[%c0_38, %c0_39] : memref<4x32xf32, #tpu.memory_space<vmem>>, vector<4x32xf32>
    %113 = vector.shape_cast %112 : vector<4x32xf32> to vector<1x4x32xf32>
    %114 = vector.shape_cast %113 : vector<1x4x32xf32> to vector<1x4x32xf32>
    %115 = vector.broadcast %114 : vector<1x4x32xf32> to vector<2x4x32xf32>
    "tpu.trace_start"() <{level = 10 : i32, message = "bqd,bsd->bqs"}> : () -> ()
    %cst_40 = arith.constant dense<0.000000e+00> : vector<2x4x84xf32>
    %116 = tpu.matmul %115, %111, %cst_40 {dimension_numbers = #tpu.dot_dimension_numbers<[2], [2], [1], [1], [0, 0, 0, 1, 1, 1], [0], [0]>} : vector<2x4x32xf32>, vector<2x84x32xf32>, vector<2x4x84xf32> -> vector<2x4x84xf32>
    "tpu.trace_stop"() : () -> ()
    %cst_41 = arith.constant 0.176776692 : f32
    %117 = vector.broadcast %cst_41 : f32 to vector<2x4x84xf32>
    %118 = arith.mulf %116, %117 : vector<2x4x84xf32>
    %c0_42 = arith.constant 0 : index
    %c0_43 = arith.constant 0 : index
    %c0_44 = arith.constant 0 : index
    %119 = vector.load %arg6[%c0_42, %c0_43, %c0_44] : memref<2x1x84xf32, #tpu.memory_space<vmem>>, vector<2x1x84xf32>
    %cst_45 = arith.constant 5.000000e-01 : f32
    %120 = vector.broadcast %cst_45 : f32 to vector<2x1x84xf32>
    %121 = arith.cmpf ogt, %119, %120 : vector<2x1x84xf32>
    %cst_46 = arith.constant -1.000000e+09 : f32
    %122 = vector.shape_cast %121 : vector<2x1x84xi1> to vector<2x1x84xi1>
    %123 = vector.broadcast %122 : vector<2x1x84xi1> to vector<2x4x84xi1>
    %124 = vector.broadcast %cst_46 : f32 to vector<2x4x84xf32>
    %125 = arith.select %123, %124, %118 : vector<2x4x84xi1>, vector<2x4x84xf32>
    %cst_47 = arith.constant dense<0xFF800000> : vector<2x4xf32>
    %126 = vector.multi_reduction <maximumf>, %125, %cst_47 [2] : vector<2x4x84xf32> to vector<2x4xf32>
    %127 = vector.shape_cast %126 : vector<2x4xf32> to vector<2x4x1xf32>
    %128 = vector.broadcast %127 : vector<2x4x1xf32> to vector<2x4x84xf32>
    %129 = arith.subf %125, %128 : vector<2x4x84xf32>
    %130 = math.exp %129 : vector<2x4x84xf32>
    %cst_48 = arith.constant dense<0.000000e+00> : vector<2x4xf32>
    %131 = vector.multi_reduction <add>, %130, %cst_48 [2] : vector<2x4x84xf32> to vector<2x4xf32>
    %132 = vector.shape_cast %131 : vector<2x4xf32> to vector<2x4x1xf32>
    %133 = tpu.reciprocal %132 {approx = true} : vector<2x4x1xf32> -> vector<2x4x1xf32>
    %134 = vector.broadcast %133 : vector<2x4x1xf32> to vector<2x4x84xf32>
    %135 = arith.mulf %130, %134 : vector<2x4x84xf32>
    "tpu.trace_start"() <{level = 10 : i32, message = "bqs,bsd->bqd"}> : () -> ()
    %cst_49 = arith.constant dense<0.000000e+00> : vector<2x4x32xf32>
    %136 = tpu.matmul %135, %111, %cst_49 {dimension_numbers = #tpu.dot_dimension_numbers<[2], [1], [1], [2], [0, 0, 0, 1, 1, 2], [0], [0]>} : vector<2x4x84xf32>, vector<2x84x32xf32>, vector<2x4x32xf32> -> vector<2x4x32xf32>
    "tpu.trace_stop"() : () -> ()
    %c0_50 = arith.constant 0 : index
    %c0_51 = arith.constant 0 : index
    %137 = vector.load %arg9[%c0_50, %c0_51] : memref<1x3xf32, #tpu.memory_space<vmem>>, vector<1x3xf32>
    %138 = vector.extract_strided_slice %136 {offsets = [0, 0, 0], sizes = [2, 1, 32], strides = [1, 1, 1]} : vector<2x4x32xf32> to vector<2x1x32xf32>
    %139 = vector.shape_cast %138 : vector<2x1x32xf32> to vector<2x32xf32>
    %c0_52 = arith.constant 0 : index
    %c0_53 = arith.constant 0 : index
    %140 = vector.load %arg8[%c0_52, %c0_53] : memref<128x3xf32, #tpu.memory_space<vmem>>, vector<32x3xf32>
    %cst_54 = arith.constant dense<0.000000e+00> : vector<2x3xf32>
    %141 = tpu.matmul %139, %140, %cst_54 {dimension_numbers = #tpu.dot_dimension_numbers<[1], [0], [0], [1], [0, 0, 1, 1], [], []>} : vector<2x32xf32>, vector<32x3xf32>, vector<2x3xf32> -> vector<2x3xf32>
    %142 = vector.broadcast %137 : vector<1x3xf32> to vector<2x3xf32>
    %143 = arith.addf %142, %141 : vector<2x3xf32>
    %144 = vector.extract_strided_slice %136 {offsets = [0, 1, 0], sizes = [2, 1, 32], strides = [1, 1, 1]} : vector<2x4x32xf32> to vector<2x1x32xf32>
    %145 = vector.shape_cast %144 : vector<2x1x32xf32> to vector<2x32xf32>
    %c32 = arith.constant 32 : index
    %c0_55 = arith.constant 0 : index
    %146 = vector.load %arg8[%c32, %c0_55] : memref<128x3xf32, #tpu.memory_space<vmem>>, vector<32x3xf32>
    %cst_56 = arith.constant dense<0.000000e+00> : vector<2x3xf32>
    %147 = tpu.matmul %145, %146, %cst_56 {dimension_numbers = #tpu.dot_dimension_numbers<[1], [0], [0], [1], [0, 0, 1, 1], [], []>} : vector<2x32xf32>, vector<32x3xf32>, vector<2x3xf32> -> vector<2x3xf32>
    %148 = arith.addf %143, %147 : vector<2x3xf32>
    %149 = vector.extract_strided_slice %136 {offsets = [0, 2, 0], sizes = [2, 1, 32], strides = [1, 1, 1]} : vector<2x4x32xf32> to vector<2x1x32xf32>
    %150 = vector.shape_cast %149 : vector<2x1x32xf32> to vector<2x32xf32>
    %c64 = arith.constant 64 : index
    %c0_57 = arith.constant 0 : index
    %151 = vector.load %arg8[%c64, %c0_57] : memref<128x3xf32, #tpu.memory_space<vmem>>, vector<32x3xf32>
    %cst_58 = arith.constant dense<0.000000e+00> : vector<2x3xf32>
    %152 = tpu.matmul %150, %151, %cst_58 {dimension_numbers = #tpu.dot_dimension_numbers<[1], [0], [0], [1], [0, 0, 1, 1], [], []>} : vector<2x32xf32>, vector<32x3xf32>, vector<2x3xf32> -> vector<2x3xf32>
    %153 = arith.addf %148, %152 : vector<2x3xf32>
    %154 = vector.extract_strided_slice %136 {offsets = [0, 3, 0], sizes = [2, 1, 32], strides = [1, 1, 1]} : vector<2x4x32xf32> to vector<2x1x32xf32>
    %155 = vector.shape_cast %154 : vector<2x1x32xf32> to vector<2x32xf32>
    %c96 = arith.constant 96 : index
    %c0_59 = arith.constant 0 : index
    %156 = vector.load %arg8[%c96, %c0_59] : memref<128x3xf32, #tpu.memory_space<vmem>>, vector<32x3xf32>
    %cst_60 = arith.constant dense<0.000000e+00> : vector<2x3xf32>
    %157 = tpu.matmul %155, %156, %cst_60 {dimension_numbers = #tpu.dot_dimension_numbers<[1], [0], [0], [1], [0, 0, 1, 1], [], []>} : vector<2x32xf32>, vector<32x3xf32>, vector<2x3xf32> -> vector<2x3xf32>
    %158 = arith.addf %153, %157 : vector<2x3xf32>
    %c0_61 = arith.constant 0 : index
    %c0_62 = arith.constant 0 : index
    %159 = vector.load %arg10[%c0_61, %c0_62] : memref<2x3xf32, #tpu.memory_space<vmem>>, vector<2x3xf32>
    tpu.vector_store %arg10[%c0_61, %c0_62], %158 {strides = array<i32>} : memref<2x3xf32, #tpu.memory_space<vmem>>, vector<2x3xf32>,
    return
  }
}

</mosaic_0001>

<bundles_post_ra>
// kernel: dt_mil_forward.1
= control target key start
LH: loop header
LB: loop body
LE: loop exit
PB: predicated region body
PF: predicated region fallthrough
CT: control target
= control target key end

     0   :  { %v4699_v3 = vmov 0.0|0.0   ;;  %vm2869_vm0 = vmmov 0   ;;  %v4697_v6 = vmov 0.0   ;;  %vm98_vm1 = vcmask 1044480   ;;  %s4684_s0 = inlined_call_operand.vmem [shape: f32[2,84,45], index: 0, kind: input, shape index: {}]   ;;  %s4685_s1 = inlined_call_operand.vmem [shape: f32[45,32], index: 1, kind: input, shape index: {}]   ;;  %s4686_s2 = inlined_call_operand.vmem [shape: f32[84,3], index: 2, kind: input, shape index: {}]   ;;  %s4687_s3 = inlined_call_operand.vmem [shape: f32[3,32], index: 3, kind: input, shape index: {}]   ;;  %s4688_s4 = inlined_call_operand.vmem [shape: f32[3,32], index: 4, kind: input, shape index: {}]   ;;  %s4689_s5 = inlined_call_operand.vmem [shape: f32[2,84,32], index: 5, kind: input, shape index: {}]   ;;  %s4690_s6 = inlined_call_operand.vmem [shape: f32[2,1,84], index: 6, kind: input, shape index: {}]   ;;  %s4691_s7 = inlined_call_operand.vmem [shape: f32[4,32], index: 7, kind: input, shape index: {}]   ;;  %s4692_s8 = inlined_call_operand.vmem [shape: f32[128,3], index: 8, kind: input, shape index: {}]   ;;  %s4693_s9 = inlined_call_operand.vmem [shape: f32[1,3], index: 9, kind: input, shape index: {}]   ;;  %s4694_s10 = inlined_call_operand.hbm [shape: f32[2,3], index: 10, kind: output, shape index: {}]  }
   0x1   :  { %v36_v0 = vld [vmem:[%s4685_s1] sm:$0xff]  ;;  %v37_v1 = vld [vmem:[%s4685_s1 + $0x8] sm:$0xff]  ;;  %v38_v2 = vld [vmem:[%s4685_s1 + $0x10] sm:$0xff]  ;;  %2673 = vmatprep.subr.bf16.mxu0 %v4699_v3  ;;  %2683 = vmatprep.subr.bf16.mxu1 %v4699_v3  ;;  %v4695_v10 = vmov 0   ;;  %vm2872_vm2 = vmmov 1   ;;  %vm64_vm4 = vcmask 367616  }
   0x2   :  { %v2674_v4 = vpack.c.bf16 %v37_v1, %v36_v0  ;;  %v39_v5 = vld [vmem:[%s4685_s1 + $0x18] sm:$0xff]  ;;  %2451 = vmatprep.mubr.msk.f32.mxu0 %vm2869_vm0, %v4697_v6  ;;  %2496 = vmatprep.mubr.msk.f32.mxu1 %vm2869_vm0, %v4697_v6  ;;  %v40_v8 = vld [vmem:[%s4685_s1 + $0x20] sm:$0xff]  ;;  %v41_v9 = vld [vmem:[%s4685_s1 + $0x28] sm:$0x1f]  ;;  %v2873_v17 = vmov 1  }
   0x3   :  { %v2677_v7 = vpack.c.bf16 %v39_v5, %v38_v2  ;;  %2803 = vset.pattern.permute.xlu1 %v4695_v10  ;;  %2802 = vset.pattern.permute.xlu0 %v4695_v10  ;;  %v2680_v11 = vpack.c.bf16 %v41_v9, %v40_v8  ;;  %v2962_v12 = vld [vmem:[%s4686_s2 + $0x10] sm:$0xff]  ;;  %vm2681_vm3 = vmpackc.low %vm98_vm1, %vm2872_vm2  ;;  %v397_v13 = vld [vmem:[%s4686_s2] sm:$0xff] }
   0x4   :  { %2675 = vmatpush3.bf16.msra.mxu0 %v2674_v4  ;;  %2685 = vmatpush3.bf16.msra.mxu1 %v2674_v4  ;;  %v42_v14 = vld [vmem:[%s4684_s0] sm:$0xff]  ;;  %v53_v15 = vld [vmem:[%s4684_s0 + $0x58] sm:$0xff]  ;;  %v2979_v16 = vld [vmem:[%s4686_s2 + $0x8] sm:$0xff] }
   0x5   :  { %2676 = vmatprep.subr.bf16.mxu0 %v4699_v3  ;;  %2686 = vmatprep.subr.bf16.mxu1 %v4699_v3 }
   0x6   :  { %420 = vperm.xlu1 %2803, %v2962_v12   ;;  %410 = vperm.xlu0 %2802, %v397_v13  }
   0x8   :  { %2678 = vmatpush3.bf16.msra.mxu0 %v2677_v7  ;;  %2688 = vmatpush3.bf16.msra.mxu1 %v2677_v7 }
   0x9   :  { %2679 = vmatprep.subr.bf16.mxu0 %v4699_v3  ;;  %2689 = vmatprep.subr.bf16.mxu1 %v4699_v3 }
   0xa   :  { %2804 = vset.pattern.permute.xlu1 %v2873_v17  ;;  %415 = vperm.xlu0 %2802, %v2979_v16  }
   0xc   :  { %2682 = vmatpush3.bf16.msk.msra.mxu0 %vm2681_vm3, %v2680_v11  ;;  %2692 = vmatpush3.bf16.msk.msra.mxu1 %vm2681_vm3, %v2680_v11 }
   0xd   :  { %2693 = vmatprep.subr.bf16.mxu0 %v4699_v3  ;;  %2713 = vmatprep.subr.bf16.mxu1 %v4699_v3 }
   0xe   :  { %15 = vsyncpa [#allocation3], 0  ;;  %v2990_v18 = vld [vmem:[%s4686_s2 + $0x30] sm:$0xff]  ;;  %v43_v19 = vld [vmem:[%s4684_s0 + $0x8] sm:$0xff]  ;;  %790 = vperm.xlu1 %2804, %v397_v13   ;;  %v2874_v27 = vmov 2   ;;  %vm485_vm5 = vcmask 261120  }
   0xf   :  { %2452 = vmatmul.mubr.msk.f32.vlgmr.msra.gmra.mrb[0].mxu0 %vm64_vm4, %v42_v14  ;;  %2497 = vmatmul.mubr.msk.f32.vlgmr.msra.gmra.mrb[0].mxu1 %vm64_vm4, %v53_v15  ;;  %v54_v20 = vld [vmem:[%s4684_s0 + $0x60] sm:$0xff]  ;;  %v3008_v21 = vld [vmem:[%s4686_s2 + $0x18] sm:$0xff]  ;;  %v44_v23 = vld [vmem:[%s4684_s0 + $0x10] sm:$0xff]  ;;  %vm505_vm6 = vcmask 257024   ;;  %vm1782_vm8 = vcmask 1043456   ;;  %vm1755_vm12 = vcmask 683008  }
  0x10   :  { %2454 = vmatprep.mubr.msk.f32.mxu0 %vm2869_vm0, %v4697_v6  ;;  %2499 = vmatprep.mubr.msk.f32.mxu1 %vm2869_vm0, %v4697_v6  ;;  %v3013_v22 = vld [vmem:[%s4686_s2 + $0x38] sm:$0xff]  ;;  %v55_v24 = vld [vmem:[%s4684_s0 + $0x68] sm:$0xff]  ;;  %v56_v26 = vld [vmem:[%s4684_s0 + $0x70] sm:$0xff]  ;;  %vm1778_vm14 = vcmask 687104   ;;  %vm1938_vm15 = vcmask 1041409   ;;  %s2875_s19 = smov [#allocation2]  }
  0x11   :  { %440 = vperm.xlu0 %2802, %v2990_v18   ;;  %v45_v25 = vld [vmem:[%s4684_s0 + $0x18] sm:$0xff]  ;;  %v46_v28 = vld [vmem:[%s4684_s0 + $0x20] sm:$0xff]  ;;  %v47_v30 = vld [vmem:[%s4684_s0 + $0x28] sm:$0xff]  ;;  %vm2258_vm1 = vcmask 17408  }
  0x12   :  { %2805 = vset.pattern.permute.xlu1 %v4695_v10  ;;  %v57_v29 = vld [vmem:[%s4684_s0 + $0x78] sm:$0xff]  ;;  %v58_v31 = vld [vmem:[%s4684_s0 + $0x80] sm:$0xff]  ;;  %v402_v32 = vld [vmem:[%s4686_s2 + $0x28] sm:$0xff] }
  0x13   :  { %2455 = vmatmul.mubr.msk.f32.gmra.mrb[2].mxu0 %vm64_vm4, %v43_v19  ;;  %2500 = vmatmul.mubr.msk.f32.gmra.mrb[2].mxu1 %vm64_vm4, %v54_v20  ;;  %v48_v33 = vld [vmem:[%s4684_s0 + $0x30] sm:$0xff]  ;;  %v59_v34 = vld [vmem:[%s4684_s0 + $0x88] sm:$0xff]  ;;  %v401_v35 = vld [vmem:[%s4686_s2 + $0x20] sm:$0xff] }
  0x14   :  { %2457 = vmatprep.mubr.msk.f32.mxu0 %vm2869_vm0, %v4697_v6  ;;  %2502 = vmatprep.mubr.msk.f32.mxu1 %vm2869_vm0, %v4697_v6  ;;  %v49_v36 = vld [vmem:[%s4684_s0 + $0x38] sm:$0xff]  ;;  %v60_v37 = vld [vmem:[%s4684_s0 + $0x90] sm:$0xff]  ;;  %v50_v38 = vld [vmem:[%s4684_s0 + $0x40] sm:$0xff] }
  0x15   :  { %425 = vperm.xlu1 %2805, %v3008_v21   ;;  %445 = vperm.xlu0 %2802, %v3013_v22   ;;  %v61_v39 = vld [vmem:[%s4684_s0 + $0x98] sm:$0xff]  ;;  %v51_v40 = vld [vmem:[%s4684_s0 + $0x48] sm:$0xff]  ;;  %v62_v41 = vld [vmem:[%s4684_s0 + $0xa0] sm:$0xff] }
  0x16   :  { %v52_v42 = vld [vmem:[%s4684_s0 + $0x50] sm:$0xf]  ;;  %v63_v43 = vld [vmem:[%s4684_s0 + $0xa8] sm:$0xf]  ;;  %v405_v44 = vld [vmem:[%s4686_s2 + $0x40] sm:$0xff] }
  0x17   :  { %2458 = vmatmul.mubr.msk.f32.gmra.mrb[4].mxu0 %vm64_vm4, %v44_v23  ;;  %2503 = vmatmul.mubr.msk.f32.gmra.mrb[4].mxu1 %vm64_vm4, %v55_v24  ;;  %v406_v45 = vld [vmem:[%s4686_s2 + $0x48] sm:$0xff]  ;;  %v407_v46 = vld [vmem:[%s4686_s2 + $0x50] sm:$0xf]  ;;  %vm4117_vm7 = vmpackc.low %vm485_vm5, %vm485_vm5 }
  0x18   :  { %2460 = vmatprep.mubr.msk.f32.mxu0 %vm2869_vm0, %v4697_v6  ;;  %2505 = vmatprep.mubr.msk.f32.mxu1 %vm2869_vm0, %v4697_v6 }
  0x19   :  { %2806 = vset.pattern.permute.xlu1 %v2873_v17  ;;  %2814 = vset.pattern.permute.xlu0 %v2874_v27 }
  0x1a   :  { %798 = vperm.xlu1 %2806, %v2962_v12   ;;  %1158 = vperm.xlu0 %2814, %v397_v13  }
  0x1b   :  { %2461 = vmatmul.mubr.msk.f32.gmra.mrb[6].mxu0 %vm64_vm4, %v45_v25  ;;  %2506 = vmatmul.mubr.msk.f32.gmra.mrb[6].mxu1 %vm64_vm4, %v56_v26 }
  0x1c   :  { %2463 = vmatprep.mubr.msk.f32.mxu0 %vm2869_vm0, %v4697_v6  ;;  %2508 = vmatprep.mubr.msk.f32.mxu1 %vm2869_vm0, %v4697_v6 }
  0x1e   :  { %2807 = vset.pattern.permute.xlu1 %v2874_v27  ;;  %1178 = vperm.xlu0 %2814, %v402_v32  }
  0x1f   :  { %2464 = vmatmul.mubr.msk.f32.gmra.mrb[8].mxu0 %vm64_vm4, %v46_v28  ;;  %2509 = vmatmul.mubr.msk.f32.gmra.mrb[8].mxu1 %vm64_vm4, %v57_v29 }
  0x20   :  { %2466 = vmatprep.mubr.msk.f32.mxu0 %vm2869_vm0, %v4697_v6  ;;  %2511 = vmatprep.mubr.msk.f32.mxu1 %vm2869_vm0, %v4697_v6 }
  0x21   :  { %1162 = vperm.xlu1 %2807, %v2979_v16  }
  0x22   :  { %1182 = vperm.xlu0 %2814, %v2990_v18  }
  0x23   :  { %2467 = vmatmul.mubr.msk.f32.gmra.mrb[10].mxu0 %vm64_vm4, %v47_v30  ;;  %2512 = vmatmul.mubr.msk.f32.gmra.mrb[10].mxu1 %vm64_vm4, %v58_v31 }
  0x24   :  { %2469 = vmatprep.mubr.msk.f32.mxu0 %vm2869_vm0, %v4697_v6  ;;  %2514 = vmatprep.mubr.msk.f32.mxu1 %vm2869_vm0, %v4697_v6 }
  0x25   :  { %2808 = vset.pattern.permute.xlu1 %v4695_v10 }
  0x26   :  { %430 = vperm.xlu1 %2808, %v401_v35   ;;  %2818 = vset.pattern.permute.xlu0 %v2873_v17 }
  0x27   :  { %2470 = vmatmul.mubr.msk.f32.gmra.mrb[12].mxu0 %vm64_vm4, %v48_v33  ;;  %2515 = vmatmul.mubr.msk.f32.gmra.mrb[12].mxu1 %vm64_vm4, %v59_v34 }
  0x28   :  { %2472 = vmatprep.mubr.msk.f32.mxu0 %vm2869_vm0, %v4697_v6  ;;  %2517 = vmatprep.mubr.msk.f32.mxu1 %vm2869_vm0, %v4697_v6 }
  0x29   :  { %794 = vperm.xlu0 %2818, %v2979_v16  }
  0x2a   :  { %2809 = vset.pattern.permute.xlu1 %v2874_v27 }
  0x2b   :  { %2473 = vmatmul.mubr.msk.f32.gmra.mrb[14].mxu0 %vm64_vm4, %v49_v36  ;;  %2518 = vmatmul.mubr.msk.f32.gmra.mrb[14].mxu1 %vm64_vm4, %v60_v37 }
  0x2c   :  { %2475 = vmatprep.mubr.msk.f32.mxu0 %vm2869_vm0, %v4697_v6  ;;  %2520 = vmatprep.mubr.msk.f32.mxu1 %vm2869_vm0, %v4697_v6 }
  0x2d   :  { %1166 = vperm.xlu1 %2809, %v2962_v12   ;;  %802 = vperm.xlu0 %2818, %v3008_v21  }
  0x2f   :  { %2476 = vmatmul.mubr.msk.f32.gmra.mrb[16].mxu0 %vm64_vm4, %v50_v38  ;;  %2521 = vmatmul.mubr.msk.f32.gmra.mrb[16].mxu1 %vm64_vm4, %v61_v39 }
  0x30   :  { %2478 = vmatprep.mubr.msk.f32.mxu0 %vm2869_vm0, %v4697_v6  ;;  %2523 = vmatprep.mubr.msk.f32.mxu1 %vm2869_vm0, %v4697_v6 }
  0x31   :  { %2810 = vset.pattern.permute.xlu1 %v4695_v10  ;;  %806 = vperm.xlu0 %2818, %v401_v35  }
  0x32   :  { %435 = vperm.xlu1 %2810, %v402_v32  }
  0x33   :  { %2479 = vmatmul.mubr.msk.f32.gmra.mrb[18].mxu0 %vm64_vm4, %v51_v40  ;;  %2524 = vmatmul.mubr.msk.f32.gmra.mrb[18].mxu1 %vm64_vm4, %v62_v41 }
  0x34   :  { %2481 = vmatprep.mubr.msk.f32.mxu0 %vm2869_vm0, %v4697_v6  ;;  %2526 = vmatprep.mubr.msk.f32.mxu1 %vm2869_vm0, %v4697_v6 }
  0x35   :  { %822 = vperm.xlu0 %2818, %v405_v44  }
  0x36   :  { %2811 = vset.pattern.permute.xlu1 %v2874_v27 }
  0x37   :  { %2482 = vmatmul.mubr.msk.f32.gmra.mrb[20].mxu0 %vm64_vm4, %v52_v42  ;;  %2527 = vmatmul.mubr.msk.f32.gmra.mrb[20].mxu1 %vm64_vm4, %v63_v43 }
  0x38   :  { %2551 = vmatprep.mubr.msk.f32.mxu0 %vm2869_vm0, %v4697_v6  ;;  %2576 = vmatprep.mubr.msk.f32.mxu1 %vm2869_vm0, %v4697_v6 }
  0x39   :  { %1170 = vperm.xlu1 %2811, %v3008_v21   ;;  %826 = vperm.xlu0 %2818, %v406_v45  }
  0x3d   :  { %2812 = vset.pattern.permute.xlu1 %v2873_v17  ;;  %830 = vperm.xlu0 %2818, %v407_v46  }
  0x3e   :  { %810 = vperm.xlu1 %2812, %v402_v32  }
  0x41   :  { %2823 = vset.pattern.permute.xlu0 %v2874_v27 }
  0x42   :  { %2813 = vset.pattern.permute.xlu1 %v2874_v27  ;;  %1198 = vperm.xlu0 %2823, %v407_v46  }
  0x43   :  { %1174 = vperm.xlu1 %2813, %v401_v35  }
  0x47   :  { %2815 = vset.pattern.permute.xlu1 %v2873_v17 }
  0x48   :  { %814 = vperm.xlu1 %2815, %v2990_v18  }
  0x4c   :  { %2816 = vset.pattern.permute.xlu1 %v4695_v10 }
  0x4d   :  { %450 = vperm.xlu1 %2816, %v405_v44  }
  0x51   :  { %2817 = vset.pattern.permute.xlu1 %v2873_v17 }
  0x52   :  { %818 = vperm.xlu1 %2817, %v3013_v22  }
  0x56   :  { %2819 = vset.pattern.permute.xlu1 %v4695_v10 }
  0x57   :  { %455 = vperm.xlu1 %2819, %v406_v45  }
  0x5b   :  { %2820 = vset.pattern.permute.xlu1 %v2874_v27 }
  0x5c   :  { %1186 = vperm.xlu1 %2820, %v3013_v22  }
  0x60   :  { %2821 = vset.pattern.permute.xlu1 %v4695_v10 }
  0x61   :  { %460 = vperm.xlu1 %2821, %v407_v46  }
  0x65   :  { %2822 = vset.pattern.permute.xlu1 %v2874_v27 }
  0x66   :  { %1190 = vperm.xlu1 %2822, %v405_v44  }
  0x6a   :  { %1194 = vperm.xlu1 %2822, %v406_v45  }
  0x85   :  { %v3173_v47 = vpop.permute.xlu1 %420  ;;  %v3185_v53 = vpop.permute.xlu0 %410 }
  0x89   :  { %v3189_v55 = vpop.permute.xlu0 %415 }
  0x8d   :  { %v3175_v48 = vpop.permute.xlu1 %790 }
  0x8e   :  { %4836 = vst [vmem:[#allocation5_spill] sm:$0xff] %v3175_v48 }
  0x90   :  { %v3193_v57 = vpop.permute.xlu0 %440 }
  0x91   :  { %4840 = vst [vmem:[#allocation9_spill] sm:$0xff] %v3193_v57 }
  0x94   :  { %v3177_v49 = vpop.permute.xlu1 %425  ;;  %v3197_v59 = vpop.permute.xlu0 %445 }
  0x95   :  { %4842 = vst [vmem:[#allocation11_spill] sm:$0xff] %v3197_v59 }
  0x99   :  { %v3179_v50 = vpop.permute.xlu1 %798  ;;  %v3201_v61 = vpop.permute.xlu0 %1158 }
  0x9a   :  { %4844 = vst [vmem:[#allocation13_spill] sm:$0xff] %v3201_v61 }
  0x9d   :  { %v3205_v63 = vpop.permute.xlu0 %1178 }
  0x9e   :  { %4846 = vst [vmem:[#allocation15_spill] sm:$0xff] %v3205_v63 }
  0xa0   :  { %v3181_v51 = vpop.permute.xlu1 %1162 }
  0xa1   :  { %4837 = vst [vmem:[#allocation6_spill] sm:$0xff] %v3181_v51  ;;  %v3209_v1 = vpop.permute.xlu0 %1182 }
  0xa2   :  { %4848 = vst [vmem:[#allocation17_spill] sm:$0xff] %v3209_v1 }
  0xa5   :  { %v3183_v52 = vpop.permute.xlu1 %430 }
  0xa8   :  { %v3213_v4 = vpop.permute.xlu0 %794 }
  0xac   :  { %v3187_v54 = vpop.permute.xlu1 %1166  ;;  %v3255_v34 = vpop.permute.xlu0 %802 }
  0xad   :  { %4838 = vst [vmem:[#allocation7_spill] sm:$0xff] %v3187_v54 }
  0xb1   :  { %v3191_v56 = vpop.permute.xlu1 %435 }
  0xb2   :  { %4839 = vst [vmem:[#allocation8_spill] sm:$0xff] %v3191_v56 }
  0xb8   :  { %v3195_v58 = vpop.permute.xlu1 %1170 }
  0xb9   :  { %4841 = vst [vmem:[#allocation10_spill] sm:$0xff] %v3195_v58 }
  0xbd   :  { %v3199_v60 = vpop.permute.xlu1 %810 }
  0xbe   :  { %4843 = vst [vmem:[#allocation12_spill] sm:$0xff] %v3199_v60 }
  0xc2   :  { %v3203_v62 = vpop.permute.xlu1 %1174 }
  0xc3   :  { %4845 = vst [vmem:[#allocation14_spill] sm:$0xff] %v3203_v62 }
  0xc7   :  { %v3207_v0 = vpop.permute.xlu1 %814 }
  0xc8   :  { %4847 = vst [vmem:[#allocation16_spill] sm:$0xff] %v3207_v0 }
  0xcc   :  { %v3211_v2 = vpop.permute.xlu1 %450 }
  0xcd   :  { %4849 = vst [vmem:[#allocation18_spill] sm:$0xff] %v3211_v2 }
  0xd1   :  { %v3215_v5 = vpop.permute.xlu1 %818 }
  0xd2   :  { %4850 = vst [vmem:[#allocation19_spill] sm:$0xff] %v3215_v5 }
  0xd6   :  { %v3261_v39 = vpop.permute.xlu1 %455 }
  0xd7   :  { %4853 = vst [vmem:[#allocation22_spill] sm:$0xff] %v3261_v39 }
  0xe2   :  { %v3217_v7 = vpop.f32.mrb[0].mxu0  ;;  %v3219_v8 = vpop.f32.mrb[0].mxu1 }
  0xe3   :  { %4851 = vst [vmem:[#allocation20_spill] sm:$0xff] %v3219_v8  ;;  %v463_v9 = vmul.f32 %v3185_v53, %v3217_v7  ;;  %v833_v11 = vmul.f32 %v3175_v48, %v3217_v7  ;;  %v1201_v12 = vmul.f32 %v3201_v61, %v3217_v7  ;;  %v474_v13 = vmul.f32 %v3185_v53, %v3219_v8  ;;  %v2453_v14 = vpop.f32.mrb[1].mxu0  ;;  %v2498_v15 = vpop.f32.mrb[1].mxu1 }
  0xe4   :  { %v844_v16 = vmul.f32 %v3175_v48, %v3219_v8  ;;  %v1212_v17 = vmul.f32 %v3201_v61, %v3219_v8 }
  0xe5   :  { %v486_v18 = vsel %vm485_vm5, %v463_v9, 0.0  ;;  %v855_v19 = vsel %vm485_vm5, %v833_v11, 0.0  ;;  %v1223_v20 = vsel %vm485_vm5, %v1201_v12, 0.0  ;;  %v514_v21 = vsel %vm485_vm5, %v474_v13, 0.0 }
  0xe6   :  { %v3237_v22 = vpop.f32.mrb[2].mxu0  ;;  %v3239_v23 = vpop.f32.mrb[2].mxu1  ;;  %v882_v30 = vsel %vm485_vm5, %v844_v16, 0.0  ;;  %v1250_v31 = vsel %vm485_vm5, %v1212_v17, 0.0 }
  0xe7   :  { %4852 = vst [vmem:[#allocation21_spill] sm:$0xff] %v3239_v23  ;;  %v464_v24 = vmul.f32 %v3189_v55, %v3237_v22  ;;  %v834_v25 = vmul.f32 %v3213_v4, %v3237_v22  ;;  %v1202_v26 = vmul.f32 %v3181_v51, %v3237_v22  ;;  %v475_v27 = vmul.f32 %v3189_v55, %v3239_v23  ;;  %v2456_v28 = vpop.f32.mrb[3].mxu0  ;;  %v2501_v29 = vpop.f32.mrb[3].mxu1 }
  0xe8   :  { %v845_v32 = vmul.f32 %v3213_v4, %v3239_v23  ;;  %v1213_v33 = vmul.f32 %v3181_v51, %v3239_v23 }
  0xe9   :  { %v487_v35 = vsel %vm485_vm5, %v464_v24, 0.0  ;;  %v856_v36 = vsel %vm485_vm5, %v834_v25, 0.0  ;;  %v1224_v37 = vsel %vm485_vm5, %v1202_v26, 0.0  ;;  %v515_v38 = vsel %vm485_vm5, %v475_v27, 0.0 }
  0xea   :  { %v488_v40 = vadd.f32 %v487_v35, %v486_v18  ;;  %v857_v41 = vadd.f32 %v856_v36, %v855_v19  ;;  %v1225_v42 = vadd.f32 %v1224_v37, %v1223_v20  ;;  %v516_v43 = vadd.f32 %v515_v38, %v514_v21  ;;  %v3263_v44 = vpop.f32.mrb[4].mxu0  ;;  %v3265_v45 = vpop.f32.mrb[4].mxu1 }
  0xeb   :  { %4854 = vst [vmem:[#allocation23_spill] sm:$0xff] %v3265_v45  ;;  %v883_v46 = vsel %vm485_vm5, %v845_v32, 0.0  ;;  %v1251_v9 = vsel %vm485_vm5, %v1213_v33, 0.0  ;;  %v465_v11 = vmul.f32 %v3173_v47, %v3263_v44  ;;  %v835_v12 = vmul.f32 %v3179_v50, %v3263_v44  ;;  %v2459_v13 = vpop.f32.mrb[5].mxu0  ;;  %v2504_v14 = vpop.f32.mrb[5].mxu1 }
  0xec   :  { %v884_v15 = vadd.f32 %v883_v46, %v882_v30  ;;  %v1252_v16 = vadd.f32 %v1251_v9, %v1250_v31  ;;  %v1203_v17 = vmul.f32 %v3187_v54, %v3263_v44  ;;  %v476_v18 = vmul.f32 %v3173_v47, %v3265_v45  ;;  %v3295_v9 = vpop.permute.xlu0 %806  ;;  %v3305_v13 = vpop.permute.xlu1 %1186 }
  0xed   :  { %v489_v19 = vsel %vm485_vm5, %v465_v11, 0.0  ;;  %v858_v20 = vsel %vm485_vm5, %v835_v12, 0.0  ;;  %v846_v21 = vmul.f32 %v3179_v50, %v3265_v45  ;;  %v1214_v24 = vmul.f32 %v3187_v54, %v3265_v45  ;;  %4856 = vst [vmem:[#allocation25_spill] sm:$0xff] %v3305_v13 }
  0xee   :  { %v490_v25 = vadd.f32 %v489_v19, %v488_v40  ;;  %v859_v26 = vadd.f32 %v858_v20, %v857_v41  ;;  %v1226_v27 = vsel %vm485_vm5, %v1203_v17, 0.0  ;;  %v517_v28 = vsel %vm485_vm5, %v476_v18, 0.0  ;;  %v3285_v29 = vpop.f32.mrb[6].mxu0  ;;  %v3287_v30 = vpop.f32.mrb[6].mxu1 }
  0xef   :  { %4855 = vst [vmem:[#allocation24_spill] sm:$0xff] %v3287_v30  ;;  %v1227_v31 = vadd.f32 %v1226_v27, %v1225_v42  ;;  %v518_v32 = vadd.f32 %v517_v28, %v516_v43  ;;  %v885_v33 = vsel %vm485_vm5, %v846_v21, 0.0  ;;  %v1253_v35 = vsel %vm485_vm5, %v1214_v24, 0.0  ;;  %v2462_v36 = vpop.f32.mrb[7].mxu0  ;;  %v2507_v37 = vpop.f32.mrb[7].mxu1 }
  0xf0   :  { %v886_v38 = vadd.f32 %v885_v33, %v884_v15  ;;  %v1254_v46 = vadd.f32 %v1253_v35, %v1252_v16  ;;  %v466_v40 = vmul.f32 %v3177_v49, %v3285_v29  ;;  %v836_v41 = vmul.f32 %v3255_v34, %v3285_v29  ;;  %v3345_v3 = vpop.permute.xlu1 %460 }
  0xf1   :  { %v1204_v42 = vmul.f32 %v3195_v58, %v3285_v29  ;;  %v477_v43 = vmul.f32 %v3177_v49, %v3287_v30  ;;  %v847_v11 = vmul.f32 %v3255_v34, %v3287_v30  ;;  %v1215_v12 = vmul.f32 %v3195_v58, %v3287_v30  ;;  %4860 = vst [vmem:[#allocation29_spill] sm:$0xff] %v3345_v3 }
  0xf2   :  { %v491_v14 = vsel %vm485_vm5, %v466_v40, 0.0  ;;  %v860_v15 = vsel %vm485_vm5, %v836_v41, 0.0  ;;  %v3309_v16 = vpop.f32.mrb[8].mxu0  ;;  %v3311_v17 = vpop.f32.mrb[8].mxu1 }
  0xf3   :  { %4857 = vst [vmem:[#allocation26_spill] sm:$0xff] %v3311_v17  ;;  %v492_v18 = vadd.f32 %v491_v14, %v490_v25  ;;  %v861_v19 = vadd.f32 %v860_v15, %v859_v26  ;;  %v1228_v20 = vsel %vm485_vm5, %v1204_v42, 0.0  ;;  %v519_v21 = vsel %vm485_vm5, %v477_v43, 0.0  ;;  %v2465_v24 = vpop.f32.mrb[9].mxu0  ;;  %v2510_v27 = vpop.f32.mrb[9].mxu1 }
  0xf4   :  { %v1229_v28 = vadd.f32 %v1228_v20, %v1227_v31  ;;  %v520_v33 = vadd.f32 %v519_v21, %v518_v32  ;;  %v887_v35 = vsel %vm485_vm5, %v847_v11, 0.0  ;;  %v1255_v36 = vsel %vm485_vm5, %v1215_v12, 0.0 }
  0xf5   :  { %v888_v37 = vadd.f32 %v887_v35, %v886_v38  ;;  %v1256_v40 = vadd.f32 %v1255_v36, %v1254_v46  ;;  %v467_v41 = vmul.f32 %v3183_v52, %v3309_v16  ;;  %v837_v25 = vmul.f32 %v3295_v9, %v3309_v16  ;;  %v3341_v36 = vpop.permute.xlu0 %822 }
  0xf6   :  { %v1205_v26 = vmul.f32 %v3203_v62, %v3309_v16  ;;  %v478_v42 = vmul.f32 %v3183_v52, %v3311_v17  ;;  %v848_v31 = vmul.f32 %v3295_v9, %v3311_v17  ;;  %v1216_v32 = vmul.f32 %v3203_v62, %v3311_v17  ;;  %v3329_v38 = vpop.f32.mrb[10].mxu0  ;;  %v3331_v46 = vpop.f32.mrb[10].mxu1  ;;  %4859 = vst [vmem:[#allocation28_spill] sm:$0xff] %v3341_v36 }
  0xf7   :  { %4858 = vst [vmem:[#allocation27_spill] sm:$0xff] %v3331_v46  ;;  %v493_v43 = vsel %vm485_vm5, %v467_v41, 0.0  ;;  %v862_v11 = vsel %vm485_vm5, %v837_v25, 0.0  ;;  %v468_v12 = vmul.f32 %v3191_v56, %v3329_v38  ;;  %v838_v14 = vmul.f32 %v3199_v60, %v3329_v38  ;;  %v2468_v15 = vpop.f32.mrb[11].mxu0  ;;  %v2513_v20 = vpop.f32.mrb[11].mxu1 }
  0xf8   :  { %v494_v21 = vadd.f32 %v493_v43, %v492_v18  ;;  %v863_v24 = vadd.f32 %v862_v11, %v861_v19  ;;  %v1230_v27 = vsel %vm485_vm5, %v1205_v26, 0.0  ;;  %v521_v35 = vsel %vm485_vm5, %v478_v42, 0.0 }
  0xf9   :  { %v1231_v10 = vadd.f32 %v1230_v27, %v1229_v28  ;;  %v522_v41 = vadd.f32 %v521_v35, %v520_v33  ;;  %v889_v25 = vsel %vm485_vm5, %v848_v31, 0.0  ;;  %v1257_v6 = vsel %vm485_vm5, %v1216_v32, 0.0 }
  0xfa   :  { %v890_v17 = vadd.f32 %v889_v25, %v888_v37  ;;  %v1258_v30 = vadd.f32 %v1257_v6, %v1256_v40  ;;  %v495_v15 = vsel %vm485_vm5, %v468_v12, 0.0  ;;  %v864_v18 = vsel %vm485_vm5, %v838_v14, 0.0  ;;  %v3349_v19 = vpop.f32.mrb[12].mxu0  ;;  %v3351_v26 = vpop.f32.mrb[12].mxu1 }
  0xfb   :  { %4861 = vst [vmem:[#allocation30_spill] sm:$0xff] %v3351_v26  ;;  %v496_v42 = vadd.f32 %v495_v15, %v494_v21  ;;  %v865_v43 = vadd.f32 %v864_v18, %v863_v24  ;;  %v1206_v28 = vmul.f32 %v3205_v63, %v3329_v38  ;;  %v479_v33 = vmul.f32 %v3191_v56, %v3331_v46  ;;  %v2471_v31 = vpop.f32.mrb[13].mxu0  ;;  %v2516_v32 = vpop.f32.mrb[13].mxu1 }
  0xfc   :  { %v849_v6 = vmul.f32 %v3199_v60, %v3331_v46  ;;  %v1217_v37 = vmul.f32 %v3205_v63, %v3331_v46  ;;  %v469_v40 = vmul.f32 %v3193_v57, %v3349_v19  ;;  %v839_v11 = vmul.f32 %v3207_v0, %v3349_v19 }
  0xfd   :  { %v1232_v12 = vsel %vm485_vm5, %v1206_v28, 0.0  ;;  %v523_v14 = vsel %vm485_vm5, %v479_v33, 0.0  ;;  %v1207_v20 = vmul.f32 %v3209_v1, %v3349_v19  ;;  %v480_v21 = vmul.f32 %v3193_v57, %v3351_v26 }
  0xfe   :  { %v1233_v24 = vadd.f32 %v1232_v12, %v1231_v10  ;;  %v524_v27 = vadd.f32 %v523_v14, %v522_v41  ;;  %v891_v35 = vsel %vm485_vm5, %v849_v6, 0.0  ;;  %v1259_v25 = vsel %vm485_vm5, %v1217_v37, 0.0  ;;  %v3373_v15 = vpop.f32.mrb[14].mxu0  ;;  %v3375_v18 = vpop.f32.mrb[14].mxu1 }
  0xff   :  { %4862 = vst [vmem:[#allocation31_spill] sm:$0xff] %v3375_v18  ;;  %v892_v31 = vadd.f32 %v891_v35, %v890_v17  ;;  %v1260_v28 = vadd.f32 %v1259_v25, %v1258_v30  ;;  %v497_v33 = vsel %vm485_vm5, %v469_v40, 0.0  ;;  %v866_v32 = vsel %vm485_vm5, %v839_v11, 0.0  ;;  %v2474_v46 = vpop.f32.mrb[15].mxu0  ;;  %v2519_v45 = vpop.f32.mrb[15].mxu1 }
 0x100   :  { %v498_v23 = vadd.f32 %v497_v33, %v496_v42  ;;  %v867_v8 = vadd.f32 %v866_v32, %v865_v43  ;;  %v1234_v10 = vsel %vm485_vm5, %v1207_v20, 0.0  ;;  %v525_v41 = vsel %vm485_vm5, %v480_v21, 0.0  ;;  %v3381_v6 = vpop.permute.xlu0 %826  ;;  %v3387_v40 = vpop.permute.xlu1 %1190 }
 0x101   :  { %4863 = vst [vmem:[#allocation32_spill] sm:$0xff] %v3381_v6  ;;  %v1235_v37 = vadd.f32 %v1234_v10, %v1233_v24  ;;  %v526_v12 = vadd.f32 %v525_v41, %v524_v27  ;;  %v850_v17 = vmul.f32 %v3207_v0, %v3351_v26  ;;  %v1218_v30 = vmul.f32 %v3209_v1, %v3351_v26 }
 0x102   :  { %4864 = vst [vmem:[#allocation33_spill] sm:$0xff] %v3387_v40  ;;  %v470_v45 = vmul.f32 %v3197_v59, %v3373_v15  ;;  %v840_v46 = vmul.f32 %v3215_v5, %v3373_v15  ;;  %v1208_v42 = vmul.f32 %v3305_v13, %v3373_v15  ;;  %v481_v43 = vmul.f32 %v3197_v59, %v3375_v18  ;;  %v3397_v11 = vpop.f32.mrb[16].mxu0  ;;  %v3399_v14 = vpop.f32.mrb[16].mxu1 }
 0x103   :  { %4865 = vst [vmem:[#allocation34_spill] sm:$0xff] %v3399_v14  ;;  %v893_v20 = vsel %vm485_vm5, %v850_v17, 0.0  ;;  %v1261_v21 = vsel %vm485_vm5, %v1218_v30, 0.0  ;;  %v851_v24 = vmul.f32 %v3215_v5, %v3375_v18  ;;  %v1219_v27 = vmul.f32 %v3305_v13, %v3375_v18  ;;  %v2477_v35 = vpop.f32.mrb[17].mxu0  ;;  %v2522_v25 = vpop.f32.mrb[17].mxu1 }
 0x104   :  { %v894_v33 = vadd.f32 %v893_v20, %v892_v31  ;;  %v1262_v32 = vadd.f32 %v1261_v21, %v1260_v28  ;;  %v499_v10 = vsel %vm485_vm5, %v470_v45, 0.0  ;;  %v868_v41 = vsel %vm485_vm5, %v840_v46, 0.0 }
 0x105   :  { %v500_v26 = vadd.f32 %v499_v10, %v498_v23  ;;  %v869_v1 = vadd.f32 %v868_v41, %v867_v8  ;;  %v1236_v17 = vsel %vm485_vm5, %v1208_v42, 0.0  ;;  %v527_v30 = vsel %vm485_vm5, %v481_v43, 0.0 }
 0x106   :  { %v1237_v63 = vadd.f32 %v1236_v17, %v1235_v37  ;;  %v528_v62 = vadd.f32 %v527_v30, %v526_v12  ;;  %v895_v58 = vsel %vm485_vm5, %v851_v24, 0.0  ;;  %v1263_v18 = vsel %vm485_vm5, %v1219_v27, 0.0  ;;  %v3413_v35 = vpop.f32.mrb[18].mxu0  ;;  %v3415_v31 = vpop.f32.mrb[18].mxu1 }
 0x107   :  { %4866 = vst [vmem:[#allocation35_spill] sm:$0xff] %v3415_v31  ;;  %v896_v28 = vadd.f32 %v895_v58, %v894_v33  ;;  %v1264_v45 = vadd.f32 %v1263_v18, %v1262_v32  ;;  %v471_v8 = vmul.f32 %v3211_v2, %v3397_v11  ;;  %v841_v23 = vmul.f32 %v3341_v36, %v3397_v11  ;;  %v2480_v46 = vpop.f32.mrb[19].mxu0  ;;  %v2525_v37 = vpop.f32.mrb[19].mxu1 }
 0x108   :  { %v3421_v12 = vpop.permute.xlu0 %830  ;;  %v1209_v42 = vmul.f32 %v3387_v40, %v3397_v11  ;;  %v482_v43 = vmul.f32 %v3211_v2, %v3399_v14  ;;  %v852_v58 = vmul.f32 %v3341_v36, %v3399_v14  ;;  %v1220_v18 = vmul.f32 %v3387_v40, %v3399_v14  ;;  %v3433_v24 = vpop.permute.xlu1 %1194 }
 0x109   :  { %4867 = vst [vmem:[#allocation36_spill] sm:$0xff] %v3421_v12  ;;  %v501_v20 = vsel %vm485_vm5, %v471_v8, 0.0  ;;  %v870_v21 = vsel %vm485_vm5, %v841_v23, 0.0  ;;  %4868 = vst [vmem:[#allocation37_spill] sm:$0xff] %v3433_v24  ;;  %v472_v27 = vmul.f32 %v3261_v39, %v3413_v35  ;;  %v842_v25 = vmul.f32 %v3381_v6, %v3413_v35 }
 0x10a   :  { %v502_v33 = vadd.f32 %v501_v20, %v500_v26  ;;  %v871_v32 = vadd.f32 %v870_v21, %v869_v1  ;;  %v1238_v10 = vsel %vm485_vm5, %v1209_v42, 0.0  ;;  %v529_v41 = vsel %vm485_vm5, %v482_v43, 0.0  ;;  %v3441_v17 = vpop.f32.mrb[20].mxu0  ;;  %v3443_v30 = vpop.f32.mrb[20].mxu1 }
 0x10b   :  { %4869 = vst [vmem:[#allocation38_spill] sm:$0xff] %v3443_v30  ;;  %v1239_v8 = vadd.f32 %v1238_v10, %v1237_v63  ;;  %v530_v23 = vadd.f32 %v529_v41, %v528_v62  ;;  %v897_v46 = vsel %vm485_vm5, %v852_v58, 0.0  ;;  %v1265_v37 = vsel %vm485_vm5, %v1220_v18, 0.0  ;;  %v2483_v14 = vpop.f32.mrb[21].mxu0  ;;  %v2528_v40 = vpop.f32.mrb[21].mxu1 }
 0x10c   :  { %v898_v13 = vadd.f32 %v897_v46, %v896_v28  ;;  %v1266_v54 = vadd.f32 %v1265_v37, %v1264_v45  ;;  %v503_v1 = vsel %vm485_vm5, %v472_v27, 0.0  ;;  %v872_v26 = vsel %vm485_vm5, %v842_v25, 0.0  ;;  %v3449_v42 = vpop.permute.xlu0 %1198 }
 0x10d   :  { %4870 = vst [vmem:[#allocation39_spill] sm:$0xff] %v3449_v42  ;;  %v504_v43 = vadd.f32 %v503_v1, %v502_v33  ;;  %v873_v20 = vadd.f32 %v872_v26, %v871_v32  ;;  %v1210_v63 = vmul.f32 %v3433_v24, %v3413_v35  ;;  %v483_v62 = vmul.f32 %v3261_v39, %v3415_v31 }
 0x10e   :  { %v853_v14 = vmul.f32 %v3381_v6, %v3415_v31  ;;  %v1221_v40 = vmul.f32 %v3433_v24, %v3415_v31  ;;  %v473_v28 = vmul.f32 %v3345_v3, %v3441_v17  ;;  %v843_v45 = vmul.f32 %v3421_v12, %v3441_v17 }
 0x10f   :  { %v1240_v58 = vsel %vm485_vm5, %v1210_v63, 0.0  ;;  %v531_v18 = vsel %vm485_vm5, %v483_v62, 0.0  ;;  %v1211_v21 = vmul.f32 %v3449_v42, %v3441_v17  ;;  %v484_v27 = vmul.f32 %v3345_v3, %v3443_v30 }
 0x110   :  { %v1241_v25 = vadd.f32 %v1240_v58, %v1239_v8  ;;  %v532_v33 = vadd.f32 %v531_v18, %v530_v23  ;;  %v899_v32 = vsel %vm485_vm5, %v853_v14, 0.0  ;;  %v1267_v10 = vsel %vm485_vm5, %v1221_v40, 0.0 }
 0x111   :  { %v900_v41 = vadd.f32 %v899_v32, %v898_v13  ;;  %v1268_v46 = vadd.f32 %v1267_v10, %v1266_v54  ;;  %v506_v37 = vsel %vm505_vm6, %v473_v28, 0.0  ;;  %v874_v1 = vsel %vm505_vm6, %v843_v45, 0.0 }
 0x112   :  { %v507_v26 = vadd.f32 %v506_v37, %v504_v43  ;;  %v875_v63 = vadd.f32 %v874_v1, %v873_v20  ;;  %v1242_v62 = vsel %vm505_vm6, %v1211_v21, 0.0  ;;  %v533_v31 = vsel %vm505_vm6, %v484_v27, 0.0 }
 0x113   :  { %v1243_v24 = vadd.f32 %v1242_v62, %v1241_v25  ;;  %v534_v51 = vadd.f32 %v533_v31, %v532_v33  ;;  %v854_v8 = vmul.f32 %v3421_v12, %v3443_v30  ;;  %v1222_v23 = vmul.f32 %v3449_v42, %v3443_v30 }
 0x114   :  { %v508_v13 = vrot.slane %v507_v26, 4  ;;  %v876_v54 = vrot.slane %v875_v63, 4 }
 0x115   :  { %v1244_v14 = vrot.slane %v1243_v24, 4  ;;  %v535_v40 = vrot.slane %v534_v51, 4  ;;  %v901_v28 = vsel %vm505_vm6, %v854_v8, 0.0  ;;  %v1269_v43 = vsel %vm505_vm6, %v1222_v23, 0.0 }
 0x116   :  { %v509_v20 = vadd.f32 %v508_v13, %v507_v26  ;;  %v877_v45 = vadd.f32 %v876_v54, %v875_v63  ;;  %v902_v58 = vadd.f32 %v901_v28, %v900_v41  ;;  %v1270_v18 = vadd.f32 %v1269_v43, %v1268_v46 }
 0x117   :  { %v1245_v21 = vadd.f32 %v1244_v14, %v1243_v24  ;;  %v536_v31 = vadd.f32 %v535_v40, %v534_v51 }
 0x118   :  { %v510_v27 = vrot.slane %v509_v20, 2  ;;  %v878_v25 = vrot.slane %v877_v45, 2  ;;  %v903_v33 = vrot.slane %v902_v58, 4  ;;  %v1271_v32 = vrot.slane %v1270_v18, 4 }
 0x119   :  { %v1246_v10 = vrot.slane %v1245_v21, 2  ;;  %v537_v37 = vrot.slane %v536_v31, 2 }
 0x11a   :  { %v511_v1 = vadd.f32 %v510_v27, %v509_v20  ;;  %v879_v62 = vadd.f32 %v878_v25, %v877_v45  ;;  %v904_v30 = vadd.f32 %v903_v33, %v902_v58  ;;  %v1272_v42 = vadd.f32 %v1271_v32, %v1270_v18 }
 0x11b   :  { %v1247_v61 = vadd.f32 %v1246_v10, %v1245_v21  ;;  %v538_v8 = vadd.f32 %v537_v37, %v536_v31 }
 0x11c   :  { %v512_v12 = vrot.slane %v511_v1, 1  ;;  %v880_v23 = vrot.slane %v879_v62, 1  ;;  %v905_v26 = vrot.slane %v904_v30, 2  ;;  %v1273_v63 = vrot.slane %v1272_v42, 2 }
 0x11d   :  { %v1248_v41 = vrot.slane %v1247_v61, 1  ;;  %v539_v46 = vrot.slane %v538_v8, 1 }
 0x11e   :  { %v513_v24 = vadd.f32 %v512_v12, %v511_v1  ;;  %v881_v51 = vadd.f32 %v880_v23, %v879_v62  ;;  %v3481_v13 = vadd.f32 %v905_v26, %v904_v30  ;;  %v3483_v54 = vadd.f32 %v1273_v63, %v1272_v42 }
 0x11f   :  { %v1249_v14 = vadd.f32 %v1248_v41, %v1247_v61  ;;  %v540_v40 = vadd.f32 %v539_v46, %v538_v8 }
 0x120   :  { %4871 = vst [vmem:[#allocation40_spill] sm:$0xff] %v3483_v54  ;;  %v541_v28 = vmul.f32 0.015625, %v513_v24  ;;  %v909_v43 = vmul.f32 0.0625, %v881_v51 }
 0x121   :  { %v3485_v20 = vmul.f32 0.25, %v1249_v14  ;;  %v3487_v45 = vmul.f32 0.015625, %v540_v40 }
 0x122   :  { %v3492_v21 = vsub.f32 %v3217_v7, %v541_v28  ;;  %v3495_v12 = vsub.f32 %v3237_v22, %v541_v28  ;;  %v3498_v30 = vsub.f32 %v3263_v44, %v541_v28  ;;  %v3501_v61 = vsub.f32 %v3285_v29, %v541_v28 }
 0x123   :  { %v3504_v42 = vsub.f32 %v3309_v16, %v541_v28  ;;  %v3507_v31 = vsub.f32 %v3329_v38, %v541_v28  ;;  %v3510_v27 = vsub.f32 %v3349_v19, %v541_v28  ;;  %v3513_v25 = vsub.f32 %v3373_v15, %v541_v28 }
 0x124   :  { %4872 = vst [vmem:[#allocation41_spill] sm:$0xff] %v3492_v21  ;;  %4873 = vst [vmem:[#allocation42_spill] sm:$0xff] %v3495_v12  ;;  %v3516_v33 = vsub.f32 %v3397_v11, %v541_v28  ;;  %v3519_v32 = vsub.f32 %v3413_v35, %v541_v28  ;;  %v3522_v10 = vsub.f32 %v3441_v17, %v541_v28 }
 0x125   :  { %4874 = vst [vmem:[#allocation43_spill] sm:$0xff] %v3498_v30  ;;  %4875 = vst [vmem:[#allocation44_spill] sm:$0xff] %v3501_v61  ;;  %v565_v37 = vmul.f32 %v3492_v21, %v3492_v21  ;;  %v566_v1 = vmul.f32 %v3495_v12, %v3495_v12  ;;  %v567_v62 = vmul.f32 %v3498_v30, %v3498_v30 }
 0x126   :  { %4876 = vst [vmem:[#allocation45_spill] sm:$0xff] %v3504_v42  ;;  %4877 = vst [vmem:[#allocation46_spill] sm:$0xff] %v3507_v31  ;;  %v568_v8 = vmul.f32 %v3501_v61, %v3501_v61  ;;  %v569_v23 = vmul.f32 %v3504_v42, %v3504_v42  ;;  %v570_v26 = vmul.f32 %v3507_v31, %v3507_v31 }
 0x127   :  { %4878 = vst [vmem:[#allocation47_spill] sm:$0xff] %v3510_v27  ;;  %4879 = vst [vmem:[#allocation48_spill] sm:$0xff] %v3513_v25  ;;  %v571_v63 = vmul.f32 %v3510_v27, %v3510_v27  ;;  %v572_v41 = vmul.f32 %v3513_v25, %v3513_v25  ;;  %v573_v46 = vmul.f32 %v3516_v33, %v3516_v33 }
 0x128   :  { %4880 = vst [vmem:[#allocation49_spill] sm:$0xff] %v3516_v33  ;;  %4881 = vst [vmem:[#allocation50_spill] sm:$0xff] %v3519_v32  ;;  %v574_v24 = vmul.f32 %v3519_v32, %v3519_v32  ;;  %v575_v51 = vmul.f32 %v3522_v10, %v3522_v10  ;;  %v587_v14 = vmul.f32 %v565_v37, %v3185_v53 }
 0x129   :  { %v588_v40 = vmul.f32 %v566_v1, %v3189_v55  ;;  %v589_v28 = vmul.f32 %v567_v62, %v3173_v47  ;;  %v590_v18 = vmul.f32 %v568_v8, %v3177_v49  ;;  %v591_v58 = vmul.f32 %v569_v23, %v3183_v52 }
 0x12a   :  { %v592_v25 = vmul.f32 %v570_v26, %v3191_v56  ;;  %v593_v33 = vmul.f32 %v571_v63, %v3193_v57  ;;  %v594_v27 = vmul.f32 %v572_v41, %v3197_v59  ;;  %v595_v32 = vmul.f32 %v573_v46, %v3211_v2 }
 0x12b   :  { %v596_v31 = vmul.f32 %v574_v24, %v3261_v39  ;;  %v597_v37 = vmul.f32 %v575_v51, %v3345_v3  ;;  %v609_v1 = vsel %vm485_vm5, %v587_v14, 0.0  ;;  %v610_v62 = vsel %vm485_vm5, %v588_v40, 0.0 }
 0x12c   :  { %v612_v8 = vsel %vm485_vm5, %v589_v28, 0.0  ;;  %v611_v42 = vadd.f32 %v610_v62, %v609_v1  ;;  %v614_v23 = vsel %vm485_vm5, %v590_v18, 0.0  ;;  %v616_v26 = vsel %vm485_vm5, %v591_v58, 0.0 }
 0x12d   :  { %v618_v63 = vsel %vm485_vm5, %v592_v25, 0.0  ;;  %v620_v41 = vsel %vm485_vm5, %v593_v33, 0.0  ;;  %v622_v46 = vsel %vm485_vm5, %v594_v27, 0.0  ;;  %v624_v24 = vsel %vm485_vm5, %v595_v32, 0.0 }
 0x12e   :  { %v626_v51 = vsel %vm485_vm5, %v596_v31, 0.0  ;;  %v613_v14 = vadd.f32 %v612_v8, %v611_v42  ;;  %v3568_v40 = vsel %vm505_vm6, %v597_v37, 0.0  ;;  %v3571_v28 = vsub.f32 %v3217_v7, %v909_v43 }
 0x12f   :  { %v3574_v18 = vsub.f32 %v3237_v22, %v909_v43  ;;  %v3577_v58 = vsub.f32 %v3263_v44, %v909_v43  ;;  %v3580_v25 = vsub.f32 %v3285_v29, %v909_v43  ;;  %v3583_v27 = vsub.f32 %v3309_v16, %v909_v43 }
 0x130   :  { %4882 = vst [vmem:[#allocation51_spill] sm:$0xff] %v3571_v28  ;;  %v3586_v42 = vsub.f32 %v3329_v38, %v909_v43  ;;  %v615_v31 = vadd.f32 %v614_v23, %v613_v14  ;;  %v3589_v33 = vsub.f32 %v3349_v19, %v909_v43  ;;  %v3592_v32 = vsub.f32 %v3373_v15, %v909_v43 }
 0x131   :  { %4883 = vst [vmem:[#allocation52_spill] sm:$0xff] %v3574_v18  ;;  %4884 = vst [vmem:[#allocation53_spill] sm:$0xff] %v3577_v58  ;;  %v3595_v37 = vsub.f32 %v3397_v11, %v909_v43  ;;  %v3598_v1 = vsub.f32 %v3413_v35, %v909_v43  ;;  %v3601_v62 = vsub.f32 %v3441_v17, %v909_v43 }
 0x132   :  { %4885 = vst [vmem:[#allocation54_spill] sm:$0xff] %v3580_v25  ;;  %4886 = vst [vmem:[#allocation55_spill] sm:$0xff] %v3583_v27  ;;  %v933_v8 = vmul.f32 %v3571_v28, %v3571_v28  ;;  %v934_v23 = vmul.f32 %v3574_v18, %v3574_v18  ;;  %v617_v14 = vadd.f32 %v616_v26, %v615_v31 }
 0x133   :  { %4887 = vst [vmem:[#allocation56_spill] sm:$0xff] %v3586_v42  ;;  %4888 = vst [vmem:[#allocation57_spill] sm:$0xff] %v3589_v33  ;;  %v935_v61 = vmul.f32 %v3577_v58, %v3577_v58  ;;  %v936_v30 = vmul.f32 %v3580_v25, %v3580_v25  ;;  %v937_v12 = vmul.f32 %v3583_v27, %v3583_v27 }
 0x134   :  { %4889 = vst [vmem:[#allocation58_spill] sm:$0xff] %v3592_v32  ;;  %4890 = vst [vmem:[#allocation59_spill] sm:$0xff] %v3595_v37  ;;  %v938_v43 = vmul.f32 %v3586_v42, %v3586_v42  ;;  %v939_v21 = vmul.f32 %v3589_v33, %v3589_v33  ;;  %v940_v28 = vmul.f32 %v3592_v32, %v3592_v32 }
 0x135   :  { %4891 = vst [vmem:[#allocation60_spill] sm:$0xff] %v3598_v1  ;;  %4892 = vst [vmem:[#allocation61_spill] sm:$0xff] %v3601_v62  ;;  %v941_v26 = vmul.f32 %v3595_v37, %v3595_v37  ;;  %v619_v31 = vadd.f32 %v618_v63, %v617_v14  ;;  %v942_v58 = vmul.f32 %v3598_v1, %v3598_v1 }
 0x136   :  { %v943_v25 = vmul.f32 %v3601_v62, %v3601_v62  ;;  %v955_v27 = vmul.f32 %v933_v8, %v3175_v48  ;;  %v956_v42 = vmul.f32 %v934_v23, %v3213_v4  ;;  %v957_v18 = vmul.f32 %v935_v61, %v3179_v50  ;;  %v4893_v8 = vld [vmem:[#allocation36_spill] sm:$0xff] }
 0x137   :  { %v958_v33 = vmul.f32 %v936_v30, %v3255_v34  ;;  %v959_v32 = vmul.f32 %v937_v12, %v3295_v9  ;;  %v621_v54 = vadd.f32 %v620_v41, %v619_v31  ;;  %v960_v37 = vmul.f32 %v938_v43, %v3199_v60 }
 0x138   :  { %v961_v63 = vmul.f32 %v939_v21, %v3207_v0  ;;  %v962_v14 = vmul.f32 %v940_v28, %v3215_v5  ;;  %v963_v1 = vmul.f32 %v941_v26, %v3341_v36  ;;  %v964_v62 = vmul.f32 %v942_v58, %v3381_v6 }
 0x139   :  { %v965_v48 = vmul.f32 %v943_v25, %v4893_v8  ;;  %v977_v23 = vsel %vm485_vm5, %v955_v27, 0.0  ;;  %v623_v61 = vadd.f32 %v622_v46, %v621_v54  ;;  %v978_v30 = vsel %vm485_vm5, %v956_v42, 0.0 }
 0x13a   :  { %v980_v12 = vsel %vm485_vm5, %v957_v18, 0.0  ;;  %v982_v41 = vsel %vm485_vm5, %v958_v33, 0.0  ;;  %v979_v43 = vadd.f32 %v978_v30, %v977_v23  ;;  %v984_v21 = vsel %vm485_vm5, %v959_v32, 0.0 }
 0x13b   :  { %v986_v28 = vsel %vm485_vm5, %v960_v37, 0.0  ;;  %v988_v26 = vsel %vm485_vm5, %v961_v63, 0.0  ;;  %v625_v31 = vadd.f32 %v624_v24, %v623_v61  ;;  %v990_v58 = vsel %vm485_vm5, %v962_v14, 0.0 }
 0x13c   :  { %v992_v25 = vsel %vm485_vm5, %v963_v1, 0.0  ;;  %v994_v54 = vsel %vm485_vm5, %v964_v62, 0.0  ;;  %v981_v46 = vadd.f32 %v980_v12, %v979_v43  ;;  %v3647_v27 = vsel %vm505_vm6, %v965_v48, 0.0 }
 0x13d   :  { %v3651_v18 = vsub.f32 %v3217_v7, %v3485_v20  ;;  %v3655_v42 = vsub.f32 %v3237_v22, %v3485_v20  ;;  %v627_v33 = vadd.f32 %v626_v51, %v625_v31  ;;  %v3659_v24 = vsub.f32 %v3263_v44, %v3485_v20 }
 0x13e   :  { %v3663_v32 = vsub.f32 %v3285_v29, %v3485_v20  ;;  %v3667_v48 = vsub.f32 %v3309_v16, %v3485_v20  ;;  %v983_v37 = vadd.f32 %v982_v41, %v981_v46  ;;  %v3671_v7 = vsub.f32 %v3329_v38, %v3485_v20  ;;  %v4905_v41 = vld [vmem:[#allocation13_spill] sm:$0xff]  ;;  %v4907_v46 = vld [vmem:[#allocation7_spill] sm:$0xff] }
 0x13f   :  { %4894 = vst [vmem:[#allocation62_spill] sm:$0xff] %v3651_v18  ;;  %4895 = vst [vmem:[#allocation63_spill] sm:$0xff] %v3655_v42  ;;  %v3675_v22 = vsub.f32 %v3349_v19, %v3485_v20  ;;  %v3679_v44 = vsub.f32 %v3373_v15, %v3485_v20  ;;  %v629_v29 = vadd.f32 %v3568_v40, %v627_v33 }
 0x140   :  { %4896 = vst [vmem:[#allocation64_spill] sm:$0xff] %v3659_v24  ;;  %4897 = vst [vmem:[#allocation65_spill] sm:$0xff] %v3663_v32  ;;  %v3684_v51 = vsub.f32 %v3397_v11, %v3485_v20  ;;  %v3688_v16 = vsub.f32 %v3413_v35, %v3485_v20  ;;  %v3692_v38 = vsub.f32 %v3441_v17, %v3485_v20 }
 0x141   :  { %4898 = vst [vmem:[#allocation66_spill] sm:$0xff] %v3667_v48  ;;  %4899 = vst [vmem:[#allocation67_spill] sm:$0xff] %v3671_v7  ;;  %v985_v19 = vadd.f32 %v984_v21, %v983_v37  ;;  %v1301_v1 = vmul.f32 %v3651_v18, %v3651_v18  ;;  %v1302_v15 = vmul.f32 %v3655_v42, %v3655_v42  ;;  %v630_v11 = vrot.slane %v629_v29, 4  ;;  %v4908_v37 = vld [vmem:[#allocation10_spill] sm:$0xff]  ;;  %v4913_v42 = vld [vmem:[#allocation33_spill] sm:$0xff] }
 0x142   :  { %4900 = vst [vmem:[#allocation68_spill] sm:$0xff] %v3675_v22  ;;  %4901 = vst [vmem:[#allocation69_spill] sm:$0xff] %v3679_v44  ;;  %v1303_v40 = vmul.f32 %v3659_v24, %v3659_v24  ;;  %v1304_v62 = vmul.f32 %v3663_v32, %v3663_v32  ;;  %v1305_v35 = vmul.f32 %v3667_v48, %v3667_v48  ;;  %v4912_v32 = vld [vmem:[#allocation25_spill] sm:$0xff] }
 0x143   :  { %4902 = vst [vmem:[#allocation70_spill] sm:$0xff] %v3684_v51  ;;  %4903 = vst [vmem:[#allocation71_spill] sm:$0xff] %v3688_v16  ;;  %v1306_v17 = vmul.f32 %v3671_v7, %v3671_v7  ;;  %v987_v20 = vadd.f32 %v986_v28, %v985_v19  ;;  %v1307_v63 = vmul.f32 %v3675_v22, %v3675_v22  ;;  %v4906_v28 = vld [vmem:[#allocation6_spill] sm:$0xff] }
 0x144   :  { %4904 = vst [vmem:[#allocation72_spill] sm:$0xff] %v3692_v38  ;;  %v1308_v14 = vmul.f32 %v3679_v44, %v3679_v44  ;;  %v1309_v23 = vmul.f32 %v3684_v51, %v3684_v51  ;;  %v631_v61 = vadd.f32 %v630_v11, %v629_v29  ;;  %v1310_v30 = vmul.f32 %v3688_v16, %v3688_v16  ;;  %v4909_v22 = vld [vmem:[#allocation14_spill] sm:$0xff]  ;;  %v4910_v51 = vld [vmem:[#allocation15_spill] sm:$0xff]  ;;  %v4911_v11 = vld [vmem:[#allocation17_spill] sm:$0xff] }
 0x145   :  { %v1311_v12 = vmul.f32 %v3692_v38, %v3692_v38  ;;  %v1323_v43 = vmul.f32 %v1301_v1, %v4905_v41  ;;  %v989_v21 = vadd.f32 %v988_v26, %v987_v20  ;;  %v1324_v31 = vmul.f32 %v1302_v15, %v4906_v28  ;;  %v4914_v1 = vld [vmem:[#allocation37_spill] sm:$0xff]  ;;  %v4915_v15 = vld [vmem:[#allocation39_spill] sm:$0xff] }
 0x146   :  { %v1325_v33 = vmul.f32 %v1303_v40, %v4907_v46  ;;  %v1326_v19 = vmul.f32 %v1304_v62, %v4908_v37  ;;  %v632_v44 = vrot.slane %v631_v61, 2  ;;  %v1327_v7 = vmul.f32 %v1305_v35, %v4909_v22 }
 0x147   :  { %v1328_v29 = vmul.f32 %v1306_v17, %v4910_v51  ;;  %v1329_v48 = vmul.f32 %v1307_v63, %v4911_v11  ;;  %v991_v16 = vadd.f32 %v990_v58, %v989_v21  ;;  %v1330_v24 = vmul.f32 %v1308_v14, %v4912_v32  ;;  %v4936_v32 = vld [vmem:[#allocation38_spill] sm:$0xff] }
 0x148   :  { %v1331_v18 = vmul.f32 %v1309_v23, %v4913_v42  ;;  %v1332_v26 = vmul.f32 %v1310_v30, %v4914_v1  ;;  %v633_v20 = vadd.f32 %v632_v44, %v631_v61  ;;  %v1333_v28 = vmul.f32 %v1311_v12, %v4915_v15  ;;  %v4934_v1 = vld [vmem:[#allocation35_spill] sm:$0xff] }
 0x149   :  { %v1345_v40 = vsel %vm485_vm5, %v1323_v43, 0.0  ;;  %v1346_v62 = vsel %vm485_vm5, %v1324_v31, 0.0  ;;  %v993_v37 = vadd.f32 %v992_v25, %v991_v16  ;;  %v1348_v17 = vsel %vm485_vm5, %v1325_v33, 0.0  ;;  %v4916_v31 = vld [vmem:[#allocation20_spill] sm:$0xff] }
 0x14a   :  { %v1347_v35 = vadd.f32 %v1346_v62, %v1345_v40  ;;  %v1350_v63 = vsel %vm485_vm5, %v1326_v19, 0.0  ;;  %v634_v58 = vrot.slane %v633_v20, 1  ;;  %v1352_v14 = vsel %vm485_vm5, %v1327_v7, 0.0 }
 0x14b   :  { %v1354_v23 = vsel %vm485_vm5, %v1328_v29, 0.0  ;;  %v1356_v30 = vsel %vm485_vm5, %v1329_v48, 0.0  ;;  %v995_v44 = vadd.f32 %v994_v54, %v993_v37  ;;  %v1358_v12 = vsel %vm485_vm5, %v1330_v24, 0.0  ;;  %v4918_v48 = vld [vmem:[#allocation21_spill] sm:$0xff]  ;;  %v4920_v24 = vld [vmem:[#allocation23_spill] sm:$0xff]  ;;  %v4922_v29 = vld [vmem:[#allocation24_spill] sm:$0xff] }
 0x14c   :  { %v1349_v61 = vadd.f32 %v1348_v17, %v1347_v35  ;;  %v1360_v43 = vsel %vm485_vm5, %v1331_v18, 0.0  ;;  %v635_v21 = vadd.f32 %v634_v58, %v633_v20  ;;  %v1362_v25 = vsel %vm485_vm5, %v1332_v26, 0.0  ;;  %v4928_v17 = vld [vmem:[#allocation30_spill] sm:$0xff]  ;;  %v4930_v58 = vld [vmem:[#allocation31_spill] sm:$0xff] }
 0x14d   :  { %v1364_v16 = vsel %vm505_vm6, %v1333_v28, 0.0  ;;  %v3740_v33 = vsub.f32 %v4916_v31, %v3487_v45  ;;  %v997_v7 = vadd.f32 %v3647_v27, %v995_v44  ;;  %v3745_v54 = vsub.f32 %v4918_v48, %v3487_v45  ;;  %v4924_v28 = vld [vmem:[#allocation26_spill] sm:$0xff]  ;;  %v4926_v27 = vld [vmem:[#allocation27_spill] sm:$0xff] }
 0x14e   :  { %v1351_v19 = vadd.f32 %v1350_v63, %v1349_v61  ;;  %v3749_v37 = vsub.f32 %v4920_v24, %v3487_v45  ;;  %v663_v18 = vmul.f32 0.015625, %v635_v21  ;;  %v3753_v26 = vsub.f32 %v4922_v29, %v3487_v45  ;;  %v4932_v21 = vld [vmem:[#allocation34_spill] sm:$0xff] }
 0x14f   :  { %4917 = vst [vmem:[#allocation20_spill] sm:$0xff] %v3740_v33  ;;  %4919 = vst [vmem:[#allocation21_spill] sm:$0xff] %v3745_v54  ;;  %v3757_v20 = vsub.f32 %v4924_v28, %v3487_v45  ;;  %v3761_v40 = vsub.f32 %v4926_v27, %v3487_v45  ;;  %v998_v62 = vrot.slane %v997_v7, 4  ;;  %v3765_v63 = vsub.f32 %v4928_v17, %v3487_v45 }
 0x150   :  { %4921 = vst [vmem:[#allocation23_spill] sm:$0xff] %v3749_v37  ;;  %4923 = vst [vmem:[#allocation24_spill] sm:$0xff] %v3753_v26  ;;  %v1353_v35 = vadd.f32 %v1352_v14, %v1351_v19  ;;  %v3769_v44 = vsub.f32 %v4930_v58, %v3487_v45  ;;  %v665_v61 = vadd.f32 1e-05, %v663_v18  ;;  %v3773_v15 = vsub.f32 %v4932_v21, %v3487_v45 }
 0x151   :  { %4925 = vst [vmem:[#allocation26_spill] sm:$0xff] %v3757_v20  ;;  %4927 = vst [vmem:[#allocation27_spill] sm:$0xff] %v3761_v40  ;;  %v3777_v42 = vsub.f32 %v4934_v1, %v3487_v45  ;;  %v3781_v14 = vsub.f32 %v4936_v32, %v3487_v45  ;;  %v999_v19 = vadd.f32 %v998_v62, %v997_v7 }
 0x152   :  { %4929 = vst [vmem:[#allocation30_spill] sm:$0xff] %v3765_v63  ;;  %4931 = vst [vmem:[#allocation31_spill] sm:$0xff] %v3769_v44  ;;  %v1355_v11 = vadd.f32 %v1354_v23, %v1353_v35  ;;  %v576_v51 = vmul.f32 %v3740_v33, %v3740_v33  ;;  %v577_v18 = vmul.f32 %v3745_v54, %v3745_v54  ;;  %2824 = vrsqrt.f32 %v665_v61 }
 0x153   :  { %4933 = vst [vmem:[#allocation34_spill] sm:$0xff] %v3773_v15  ;;  %4935 = vst [vmem:[#allocation35_spill] sm:$0xff] %v3777_v42  ;;  %v578_v22 = vmul.f32 %v3749_v37, %v3749_v37  ;;  %v579_v46 = vmul.f32 %v3753_v26, %v3753_v26  ;;  %v580_v41 = vmul.f32 %v3757_v20, %v3757_v20  ;;  %v1000_v45 = vrot.slane %v999_v19, 2 }
 0x154   :  { %4937 = vst [vmem:[#allocation38_spill] sm:$0xff] %v3781_v14  ;;  %v1357_v38 = vadd.f32 %v1356_v30, %v1355_v11  ;;  %v581_v23 = vmul.f32 %v3761_v40, %v3761_v40  ;;  %v582_v7 = vmul.f32 %v3765_v63, %v3765_v63  ;;  %v583_v62 = vmul.f32 %v3769_v44, %v3769_v44 }
 0x155   :  { %v584_v35 = vmul.f32 %v3773_v15, %v3773_v15  ;;  %v585_v61 = vmul.f32 %v3777_v42, %v3777_v42  ;;  %v586_v20 = vmul.f32 %v3781_v14, %v3781_v14  ;;  %v1001_v26 = vadd.f32 %v1000_v45, %v999_v19 }
 0x156   :  { %v1359_v11 = vadd.f32 %v1358_v12, %v1357_v38  ;;  %v598_v30 = vmul.f32 %v576_v51, %v3185_v53  ;;  %v599_v40 = vmul.f32 %v577_v18, %v3189_v55  ;;  %v600_v63 = vmul.f32 %v578_v22, %v3173_v47 }
 0x157   :  { %v601_v37 = vmul.f32 %v579_v46, %v3177_v49  ;;  %v602_v44 = vmul.f32 %v580_v41, %v3183_v52  ;;  %v603_v15 = vmul.f32 %v581_v23, %v3191_v56  ;;  %v1002_v54 = vrot.slane %v1001_v26, 1 }
 0x158   :  { %v1361_v33 = vadd.f32 %v1360_v43, %v1359_v11  ;;  %v604_v42 = vmul.f32 %v582_v7, %v3193_v57  ;;  %v605_v14 = vmul.f32 %v583_v62, %v3197_v59  ;;  %v606_v38 = vmul.f32 %v584_v35, %v3211_v2  ;;  %v4952_v57 = vld [vmem:[#allocation5_spill] sm:$0xff] }
 0x159   :  { %v607_v51 = vmul.f32 %v585_v61, %v3261_v39  ;;  %v608_v12 = vmul.f32 %v586_v20, %v3345_v3  ;;  %v636_v22 = vsel %vm485_vm5, %v598_v30, 0.0  ;;  %v1003_v19 = vadd.f32 %v1002_v54, %v1001_v26  ;;  %v4939_v30 = vld [vmem:[#allocation40_spill] sm:$0xff] }
 0x15a   :  { %v1363_v46 = vadd.f32 %v1362_v25, %v1361_v33  ;;  %v637_v41 = vsel %vm485_vm5, %v599_v40, 0.0  ;;  %v639_v18 = vsel %vm485_vm5, %v600_v63, 0.0  ;;  %v641_v43 = vsel %vm485_vm5, %v601_v37, 0.0  ;;  %v3829_v25 = vld [vmem:[%s4687_s3] ss:$0 sm:$0xff] }
 0x15b   :  { %v638_v45 = vadd.f32 %v637_v41, %v636_v22  ;;  %v643_v23 = vsel %vm485_vm5, %v602_v44, 0.0  ;;  %v645_v7 = vsel %vm485_vm5, %v603_v15, 0.0  ;;  %v1031_v62 = vmul.f32 0.0625, %v1003_v19  ;;  %v3844_v44 = vld [vmem:[%s4688_s4] ss:$0 sm:$0xff] }
 0x15c   :  { %v1365_v35 = vadd.f32 %v1364_v16, %v1363_v46  ;;  %v647_v61 = vsel %vm485_vm5, %v604_v42, 0.0  ;;  %v649_v20 = vsel %vm485_vm5, %v605_v14, 0.0  ;;  %v3824_v11 = vpop.eup %2824  ;;  %v651_v54 = vsel %vm485_vm5, %v606_v38, 0.0 }
 0x15d   :  { %v640_v33 = vadd.f32 %v639_v18, %v638_v45  ;;  %v653_v37 = vsel %vm485_vm5, %v607_v51, 0.0  ;;  %v3834_v15 = vsel %vm505_vm6, %v608_v12, 0.0  ;;  %v679_v42 = vmul.f32 %v3824_v11, %v3522_v10  ;;  %v4941_v12 = vld [vmem:[#allocation41_spill] sm:$0xff]  ;;  %v4942_v10 = vld [vmem:[#allocation42_spill] sm:$0xff] }
 0x15e   :  { %v1033_v16 = vadd.f32 1e-05, %v1031_v62  ;;  %v1366_v26 = vrot.slane %v1365_v35, 4  ;;  %v4938_v40 = vrot.slane %v3481_v13, 1  ;;  %v4940_v38 = vrot.slane %v4939_v30, 1 }
 0x15f   :  { %v642_v14 = vadd.f32 %v641_v43, %v640_v33  ;;  %v669_v22 = vmul.f32 %v3824_v11, %v4941_v12  ;;  %v670_v19 = vmul.f32 %v3824_v11, %v4942_v10  ;;  %v706_v46 = vmul.f32 %v3829_v25, %v679_v42 }
 0x160   :  { %v908_v63 = vadd.f32 %v4938_v40, %v3481_v13  ;;  %v1276_v51 = vadd.f32 %v4940_v38, %v4939_v30  ;;  %2826 = vrsqrt.f32 %v1033_v16  ;;  %v1367_v13 = vadd.f32 %v1366_v26, %v1365_v35 }
 0x161   :  { %v644_v18 = vadd.f32 %v643_v23, %v642_v14  ;;  %v3857_v43 = vmul.f32 %v3829_v25, %v669_v22  ;;  %v3860_v62 = vmul.f32 %v3829_v25, %v670_v19  ;;  %v3863_v33 = vadd.f32 %v3844_v44, %v706_v46 }
 0x162   :  { %v910_v41 = vmul.f32 0.0625, %v908_v63  ;;  %v3854_v45 = vmul.f32 0.25, %v1276_v51  ;;  %v1368_v40 = vrot.slane %v1367_v13, 2 }
 0x163   :  { %4943 = vst [vmem:[#allocation40_spill] sm:$0xff] %v3863_v33  ;;  %v646_v35 = vadd.f32 %v645_v7, %v644_v18 }
 0x164   :  { %v3866_v30 = vsub.f32 %v4916_v31, %v910_v41  ;;  %v3869_v42 = vsub.f32 %v4918_v48, %v910_v41  ;;  %v3872_v23 = vsub.f32 %v4920_v24, %v910_v41  ;;  %v3875_v16 = vsub.f32 %v4922_v29, %v910_v41 }
 0x165   :  { %v3878_v26 = vsub.f32 %v4924_v28, %v910_v41  ;;  %v1369_v63 = vadd.f32 %v1368_v40, %v1367_v13  ;;  %v3881_v14 = vsub.f32 %v4926_v27, %v910_v41  ;;  %v3884_v38 = vsub.f32 %v4928_v17, %v910_v41 }
 0x166   :  { %4944 = vst [vmem:[#allocation41_spill] sm:$0xff] %v3872_v23  ;;  %4945 = vst [vmem:[#allocation42_spill] sm:$0xff] %v3875_v16  ;;  %v3887_v51 = vsub.f32 %v4930_v58, %v910_v41  ;;  %v648_v7 = vadd.f32 %v647_v61, %v646_v35  ;;  %v3890_v12 = vsub.f32 %v4932_v21, %v910_v41 }
 0x167   :  { %4946 = vst [vmem:[#allocation73_spill] sm:$0xff] %v3878_v26  ;;  %4947 = vst [vmem:[#allocation74_spill] sm:$0xff] %v3881_v14  ;;  %v3893_v22 = vsub.f32 %v4934_v1, %v910_v41  ;;  %v3896_v10 = vsub.f32 %v4936_v32, %v910_v41  ;;  %v1370_v19 = vrot.slane %v1369_v63, 1  ;;  %v944_v46 = vmul.f32 %v3866_v30, %v3866_v30 }
 0x168   :  { %4948 = vst [vmem:[#allocation75_spill] sm:$0xff] %v3884_v38  ;;  %4949 = vst [vmem:[#allocation76_spill] sm:$0xff] %v3887_v51  ;;  %v945_v13 = vmul.f32 %v3869_v42, %v3869_v42  ;;  %v946_v18 = vmul.f32 %v3872_v23, %v3872_v23  ;;  %v650_v61 = vadd.f32 %v649_v20, %v648_v7 }
 0x169   :  { %4950 = vst [vmem:[#allocation77_spill] sm:$0xff] %v3890_v12  ;;  %4951 = vst [vmem:[#allocation78_spill] sm:$0xff] %v3893_v22  ;;  %v947_v40 = vmul.f32 %v3875_v16, %v3875_v16  ;;  %v948_v35 = vmul.f32 %v3878_v26, %v3878_v26  ;;  %v949_v41 = vmul.f32 %v3881_v14, %v3881_v14  ;;  %v3938_v16 = vld [vmem:[%s4688_s4 + $0x1] ss:$0 sm:$0xff] }
 0x16a   :  { %v1371_v33 = vadd.f32 %v1370_v19, %v1369_v63  ;;  %v950_v3 = vmul.f32 %v3884_v38, %v3884_v38  ;;  %v951_v39 = vmul.f32 %v3887_v51, %v3887_v51  ;;  %v952_v2 = vmul.f32 %v3890_v12, %v3890_v12  ;;  %v3921_v14 = vpop.eup %2826  ;;  %v3926_v63 = vld [vmem:[%s4687_s3 + $0x1] ss:$0 sm:$0xff] }
 0x16b   :  { %v652_v20 = vadd.f32 %v651_v54, %v650_v61  ;;  %v953_v7 = vmul.f32 %v3893_v22, %v3893_v22  ;;  %v954_v59 = vmul.f32 %v3896_v10, %v3896_v10  ;;  %v966_v26 = vmul.f32 %v944_v46, %v4952_v57  ;;  %v4953_v22 = vld [vmem:[#allocation61_spill] sm:$0xff] }
 0x16c   :  { %v1399_v19 = vmul.f32 0.25, %v1371_v33  ;;  %v967_v51 = vmul.f32 %v945_v13, %v3213_v4  ;;  %v968_v54 = vmul.f32 %v946_v18, %v3179_v50  ;;  %v969_v61 = vmul.f32 %v947_v40, %v3255_v34 }
 0x16d   :  { %v1047_v12 = vmul.f32 %v3921_v14, %v4953_v22  ;;  %v654_v38 = vadd.f32 %v653_v37, %v652_v20  ;;  %v970_v46 = vmul.f32 %v948_v35, %v3295_v9  ;;  %v971_v56 = vmul.f32 %v949_v41, %v3199_v60 }
 0x16e   :  { %v1401_v33 = vadd.f32 1e-05, %v1399_v19  ;;  %v972_v13 = vmul.f32 %v950_v3, %v3207_v0  ;;  %v973_v18 = vmul.f32 %v951_v39, %v3215_v5  ;;  %v974_v40 = vmul.f32 %v952_v2, %v3341_v36  ;;  %v4970_v5 = vld [vmem:[#allocation10_spill] sm:$0xff] }
 0x16f   :  { %v1074_v23 = vmul.f32 %v3926_v63, %v1047_v12  ;;  %v656_v37 = vadd.f32 %v3834_v15, %v654_v38  ;;  %v975_v22 = vmul.f32 %v953_v7, %v3381_v6  ;;  %v976_v35 = vmul.f32 %v954_v59, %v4893_v8  ;;  %v4968_v6 = vld [vmem:[#allocation6_spill] sm:$0xff] }
 0x170   :  { %2828 = vrsqrt.f32 %v1401_v33  ;;  %v1004_v41 = vsel %vm485_vm5, %v966_v26, 0.0  ;;  %v1005_v20 = vsel %vm485_vm5, %v967_v51, 0.0  ;;  %v1007_v19 = vsel %vm485_vm5, %v968_v54, 0.0 }
 0x171   :  { %v3951_v3 = vadd.f32 %v3938_v16, %v1074_v23  ;;  %v657_v39 = vrot.slane %v656_v37, 4  ;;  %v1006_v2 = vadd.f32 %v1005_v20, %v1004_v41  ;;  %v1009_v12 = vsel %vm485_vm5, %v969_v61, 0.0 }
 0x172   :  { %v1011_v15 = vsel %vm485_vm5, %v970_v46, 0.0  ;;  %v1013_v38 = vsel %vm485_vm5, %v971_v56, 0.0  ;;  %v1015_v59 = vsel %vm485_vm5, %v972_v13, 0.0  ;;  %v1017_v7 = vsel %vm485_vm5, %v973_v18, 0.0 }
 0x173   :  { %4954 = vst [vmem:[#allocation5_spill] sm:$0xff] %v3951_v3  ;;  %v658_v26 = vadd.f32 %v657_v39, %v656_v37  ;;  %v1008_v33 = vadd.f32 %v1007_v19, %v1006_v2  ;;  %v1019_v51 = vsel %vm485_vm5, %v974_v40, 0.0  ;;  %v1021_v54 = vsel %vm485_vm5, %v975_v22, 0.0  ;;  %v4022_v39 = vld [vmem:[%s4687_s3 + $0x2] ss:$0 sm:$0xff] }
 0x174   :  { %v1023_v23 = vsel %vm505_vm6, %v976_v35, 0.0  ;;  %v3963_v41 = vsub.f32 %v4916_v31, %v3854_v45  ;;  %v3967_v61 = vsub.f32 %v4918_v48, %v3854_v45  ;;  %v3971_v56 = vsub.f32 %v4920_v24, %v3854_v45  ;;  %v4967_v3 = vld [vmem:[#allocation13_spill] sm:$0xff] }
 0x175   :  { %v659_v46 = vrot.slane %v658_v26, 2  ;;  %v1010_v13 = vadd.f32 %v1009_v12, %v1008_v33  ;;  %v3975_v18 = vsub.f32 %v4922_v29, %v3854_v45  ;;  %v3979_v40 = vsub.f32 %v4924_v28, %v3854_v45 }
 0x176   :  { %4955 = vst [vmem:[#allocation61_spill] sm:$0xff] %v3963_v41  ;;  %4956 = vst [vmem:[#allocation79_spill] sm:$0xff] %v3967_v61  ;;  %v3983_v31 = vsub.f32 %v4926_v27, %v3854_v45  ;;  %v3987_v48 = vsub.f32 %v4928_v17, %v3854_v45  ;;  %v3991_v24 = vsub.f32 %v4930_v58, %v3854_v45 }
 0x177   :  { %4957 = vst [vmem:[#allocation80_spill] sm:$0xff] %v3971_v56  ;;  %4958 = vst [vmem:[#allocation81_spill] sm:$0xff] %v3975_v18  ;;  %v3995_v29 = vsub.f32 %v4932_v21, %v3854_v45  ;;  %v660_v37 = vadd.f32 %v659_v46, %v658_v26  ;;  %v1012_v22 = vadd.f32 %v1011_v15, %v1010_v13  ;;  %v4966_v26 = vld [vmem:[#allocation72_spill] sm:$0xff] }
 0x178   :  { %4959 = vst [vmem:[#allocation82_spill] sm:$0xff] %v3979_v40  ;;  %4960 = vst [vmem:[#allocation83_spill] sm:$0xff] %v3983_v31  ;;  %v3999_v28 = vsub.f32 %v4934_v1, %v3854_v45  ;;  %v4003_v27 = vsub.f32 %v4936_v32, %v3854_v45  ;;  %v1312_v17 = vmul.f32 %v3963_v41, %v3963_v41 }
 0x179   :  { %4961 = vst [vmem:[#allocation84_spill] sm:$0xff] %v3987_v48  ;;  %4962 = vst [vmem:[#allocation85_spill] sm:$0xff] %v3991_v24  ;;  %v1313_v58 = vmul.f32 %v3967_v61, %v3967_v61  ;;  %v1314_v21 = vmul.f32 %v3971_v56, %v3971_v56  ;;  %v1315_v35 = vmul.f32 %v3975_v18, %v3975_v18  ;;  %v661_v20 = vrot.slane %v660_v37, 1  ;;  %v4974_v18 = vld [vmem:[#allocation25_spill] sm:$0xff] }
 0x17a   :  { %4963 = vst [vmem:[#allocation86_spill] sm:$0xff] %v3995_v29  ;;  %4964 = vst [vmem:[#allocation87_spill] sm:$0xff] %v3999_v28  ;;  %v1014_v19 = vadd.f32 %v1013_v38, %v1012_v22  ;;  %v1316_v1 = vmul.f32 %v3979_v40, %v3979_v40  ;;  %v1317_v32 = vmul.f32 %v3983_v31, %v3983_v31  ;;  %v4017_v45 = vpop.eup %2828  ;;  %v4971_v40 = vld [vmem:[#allocation14_spill] sm:$0xff] }
 0x17b   :  { %4965 = vst [vmem:[#allocation88_spill] sm:$0xff] %v4003_v27  ;;  %v1318_v2 = vmul.f32 %v3987_v48, %v3987_v48  ;;  %v1319_v12 = vmul.f32 %v3991_v24, %v3991_v24  ;;  %v1320_v15 = vmul.f32 %v3995_v29, %v3995_v29  ;;  %v1321_v38 = vmul.f32 %v3999_v28, %v3999_v28  ;;  %v4969_v48 = vld [vmem:[#allocation7_spill] sm:$0xff] }
 0x17c   :  { %v1415_v33 = vmul.f32 %v4017_v45, %v4966_v26  ;;  %v662_v46 = vadd.f32 %v661_v20, %v660_v37  ;;  %v1016_v13 = vadd.f32 %v1015_v59, %v1014_v19  ;;  %v1322_v22 = vmul.f32 %v4003_v27, %v4003_v27  ;;  %v4972_v37 = vld [vmem:[#allocation15_spill] sm:$0xff]  ;;  %v4973_v20 = vld [vmem:[#allocation17_spill] sm:$0xff] }
 0x17d   :  { %v1334_v8 = vmul.f32 %v1312_v17, %v4967_v3  ;;  %v1335_v36 = vmul.f32 %v1313_v58, %v4968_v6  ;;  %v1336_v24 = vmul.f32 %v1314_v21, %v4969_v48  ;;  %v1337_v0 = vmul.f32 %v1315_v35, %v4970_v5  ;;  %v4975_v17 = vld [vmem:[#allocation33_spill] sm:$0xff]  ;;  %v4977_v35 = vld [vmem:[#allocation39_spill] sm:$0xff] }
 0x17e   :  { %v4041_v29 = vmul.f32 %v4022_v39, %v1415_v33  ;;  %v664_v28 = vmul.f32 0.015625, %v662_v46  ;;  %v1018_v31 = vadd.f32 %v1017_v7, %v1016_v13  ;;  %v1338_v26 = vmul.f32 %v1316_v1, %v4971_v40  ;;  %v4976_v21 = vld [vmem:[#allocation37_spill] sm:$0xff] }
 0x17f   :  { %v1339_v59 = vmul.f32 %v1317_v32, %v4972_v37  ;;  %v1340_v19 = vmul.f32 %v1318_v2, %v4973_v20  ;;  %v1341_v56 = vmul.f32 %v1319_v12, %v4974_v18  ;;  %v1342_v61 = vmul.f32 %v1320_v15, %v4975_v17 }
 0x180   :  { %v666_v58 = vadd.f32 1e-05, %v664_v28  ;;  %v1020_v41 = vadd.f32 %v1019_v51, %v1018_v31  ;;  %v1343_v27 = vmul.f32 %v1321_v38, %v4976_v21  ;;  %v1344_v60 = vmul.f32 %v1322_v22, %v4977_v35  ;;  %v4979_v22 = vld [vmem:[#allocation52_spill] sm:$0xff] }
 0x181   :  { %v1372_v33 = vsel %vm485_vm5, %v1334_v8, 0.0  ;;  %v1373_v7 = vsel %vm485_vm5, %v1335_v36, 0.0  ;;  %v1375_v1 = vsel %vm485_vm5, %v1336_v24, 0.0  ;;  %v1377_v32 = vsel %vm485_vm5, %v1337_v0, 0.0 }
 0x182   :  { %2830 = vrsqrt.f32 %v666_v58  ;;  %v1022_v2 = vadd.f32 %v1021_v54, %v1020_v41  ;;  %v1374_v46 = vadd.f32 %v1373_v7, %v1372_v33  ;;  %v1379_v12 = vsel %vm485_vm5, %v1338_v26, 0.0  ;;  %v4978_v41 = vld [vmem:[#allocation51_spill] sm:$0xff] }
 0x183   :  { %v1381_v28 = vsel %vm485_vm5, %v1339_v59, 0.0  ;;  %v1383_v51 = vsel %vm485_vm5, %v1340_v19, 0.0  ;;  %v1385_v31 = vsel %vm485_vm5, %v1341_v56, 0.0  ;;  %v1387_v15 = vsel %vm485_vm5, %v1342_v61, 0.0 }
 0x184   :  { %v1024_v8 = vadd.f32 %v1023_v23, %v1022_v2  ;;  %v1376_v38 = vadd.f32 %v1375_v1, %v1374_v46  ;;  %v1389_v36 = vsel %vm485_vm5, %v1343_v27, 0.0  ;;  %v4061_v24 = vsel %vm505_vm6, %v1344_v60, 0.0  ;;  %v375_v27 = vld [vmem:[%s4689_s5] sm:$0xff]  ;;  %v376_v60 = vld [vmem:[%s4689_s5 + $0x8] sm:$0xff] }
 0x185   :  { %v723_v0 = vadd.f32 %v3844_v44, %v3857_v43  ;;  %v724_v54 = vadd.f32 %v3844_v44, %v3860_v62  ;;  %v1037_v13 = vmul.f32 %v3921_v14, %v4978_v41  ;;  %v1038_v56 = vmul.f32 %v3921_v14, %v4979_v22  ;;  %v4980_v43 = vld [vmem:[#allocation62_spill] sm:$0xff]  ;;  %v4981_v62 = vld [vmem:[#allocation63_spill] sm:$0xff]  ;;  %v4088_v1 = vld [vmem:[%s4688_s4 + $0x2] ss:$0 sm:$0xff]  ;;  %s2266_s4 = sshll.u32 %s2875_s19, 4  ;;  %s2267_s4 = int_to_ptr.vmem [resolvable:$true] %s2266_s4 }
 0x186   :  { %v1025_v61 = vrot.slane %v1024_v8, 4  ;;  %v1378_v23 = vadd.f32 %v1377_v32, %v1376_v38  ;;  %v1405_v26 = vmul.f32 %v4017_v45, %v4980_v43  ;;  %v1406_v59 = vmul.f32 %v4017_v45, %v4981_v62  ;;  %p2849_p1 = scmp.lt.s32.totalorder %s2267_s4, %s2267_s4 }
 0x187   :  { %v745_v19 = vmul.f32 %v723_v0, %v3185_v53  ;;  %v746_v58 = vmul.f32 %v724_v54, %v3189_v55  ;;  %v1064_v33 = vmul.f32 %v3926_v63, %v1037_v13  ;;  %v1065_v7 = vmul.f32 %v3926_v63, %v1038_v56 }
 0x188   :  { %v1026_v32 = vadd.f32 %v1025_v61, %v1024_v8  ;;  %v1380_v2 = vadd.f32 %v1379_v12, %v1378_v23  ;;  %v1432_v46 = vmul.f32 %v4022_v39, %v1405_v26  ;;  %v1433_v38 = vmul.f32 %v4022_v39, %v1406_v59  ;;  %v4982_v8 = vld [vmem:[#allocation43_spill] sm:$0xff]  ;;  %v4983_v23 = vld [vmem:[#allocation44_spill] sm:$0xff] }
 0x189   :  { %v767_v41 = vadd.f32 %v745_v19, %v375_v27  ;;  %v768_v22 = vadd.f32 %v746_v58, %v376_v60  ;;  %v1091_v0 = vadd.f32 %v3938_v16, %v1064_v33  ;;  %v1092_v54 = vadd.f32 %v3938_v16, %v1065_v7  ;;  %v4984_v58 = vld [vmem:[#allocation38_spill] sm:$0xff] }
 0x18a   :  { %v1027_v13 = vrot.slane %v1026_v32, 2  ;;  %v1382_v43 = vadd.f32 %v1381_v28, %v1380_v2  ;;  %v1459_v56 = vadd.f32 %v4088_v1, %v1432_v46  ;;  %v1460_v62 = vadd.f32 %v4088_v1, %v1433_v38  ;;  %v4985_v46 = vld [vmem:[#allocation20_spill] sm:$0xff] }
 0x18b   :  { %v1113_v35 = vmul.f32 %v1091_v0, %v4952_v57  ;;  %v1114_v12 = vmul.f32 %v1092_v54, %v3213_v4  ;;  %v671_v61 = vmul.f32 %v3824_v11, %v4982_v8  ;;  %v672_v27 = vmul.f32 %v3824_v11, %v4983_v23  ;;  %v4986_v8 = vld [vmem:[#allocation21_spill] sm:$0xff] }
 0x18c   :  { %v4102_v60 = vpop.eup %2830  ;;  %v1028_v26 = vadd.f32 %v1027_v13, %v1026_v32  ;;  %v1384_v59 = vadd.f32 %v1383_v51, %v1382_v43  ;;  %v1481_v28 = vmul.f32 %v1459_v56, %v4967_v3  ;;  %v1482_v19 = vmul.f32 %v1460_v62, %v4968_v6 }
 0x18d   :  { %v690_v33 = vmul.f32 %v4102_v60, %v4984_v58  ;;  %v1135_v7 = vadd.f32 %v1113_v35, %v767_v41  ;;  %v1136_v2 = vadd.f32 %v1114_v12, %v768_v22  ;;  %v680_v38 = vmul.f32 %v4102_v60, %v4985_v46 }
 0x18e   :  { %v1029_v0 = vrot.slane %v1028_v26, 1  ;;  %v1386_v54 = vadd.f32 %v1385_v31, %v1384_v59  ;;  %v681_v23 = vmul.f32 %v4102_v60, %v4986_v8  ;;  %v698_v32 = vmul.f32 %v3829_v25, %v671_v61 }
 0x18f   :  { %v717_v51 = vmul.f32 %v3829_v25, %v690_v33  ;;  %v1503_v13 = vadd.f32 %v1481_v28, %v1135_v7  ;;  %v1504_v43 = vadd.f32 %v1482_v19, %v1136_v2  ;;  %v707_v56 = vmul.f32 %v3829_v25, %v680_v38  ;;  %v386_v28 = vld [vmem:[%s4689_s5 + $0x58] sm:$0xff]  ;;  %v4989_v38 = vld [vmem:[#allocation53_spill] sm:$0xff] }
 0x190   :  { %v1030_v62 = vadd.f32 %v1029_v0, %v1028_v26  ;;  %v1388_v58 = vadd.f32 %v1387_v15, %v1386_v54  ;;  %v708_v31 = vmul.f32 %v3829_v25, %v681_v23  ;;  %v699_v41 = vmul.f32 %v3829_v25, %v672_v27  ;;  %v377_v27 = vld [vmem:[%s4689_s5 + $0x10] sm:$0xff]  ;;  %v378_v2 = vld [vmem:[%s4689_s5 + $0x18] sm:$0xff] }
 0x191   :  { %v4124_v22 = vadd.f32 %v3844_v44, %v717_v51  ;;  %v4126_v12 = vpack.c.bf16 %v1504_v43, %v1503_v13  ;;  %v734_v61 = vadd.f32 %v3844_v44, %v707_v56  ;;  %v725_v26 = vadd.f32 %v3844_v44, %v698_v32  ;;  %v4990_v54 = vld [vmem:[#allocation54_spill] sm:$0xff] }
 0x192   :  { %v1032_v15 = vmul.f32 0.0625, %v1030_v62  ;;  %v1390_v59 = vadd.f32 %v1389_v36, %v1388_v58  ;;  %v735_v19 = vadd.f32 %v3844_v44, %v708_v31  ;;  %v726_v33 = vadd.f32 %v3844_v44, %v699_v41  ;;  %v387_v36 = vld [vmem:[%s4689_s5 + $0x60] sm:$0xff] }
 0x193   :  { %2696 = vmatpush3.bf16.xpose.msk.msra.mxu0 %vm4117_vm7, %v4126_v12  ;;  %v756_v7 = vmul.f32 %v734_v61, %v3185_v53  ;;  %v747_v46 = vmul.f32 %v725_v26, %v3173_v47  ;;  %v1039_v0 = vmul.f32 %v3921_v14, %v4989_v38  ;;  %v1040_v8 = vmul.f32 %v3921_v14, %v4990_v54  ;;  %v4992_v26 = vld [vmem:[#allocation64_spill] sm:$0xff] }
 0x194   :  { %v1034_v23 = vadd.f32 1e-05, %v1032_v15  ;;  %v1392_v32 = vadd.f32 %v4061_v24, %v1390_v59  ;;  %v757_v51 = vmul.f32 %v735_v19, %v3189_v55  ;;  %v4991_v13 = vmov 0.0|0.0   ;;  %v4993_v59 = vld [vmem:[#allocation65_spill] sm:$0xff] }
 0x195   :  { %2697 = vmatprep.subr.bf16.mxu0 %v4991_v13  ;;  %v748_v53 = vmul.f32 %v726_v33, %v3177_v49  ;;  %v4157_v43 = vadd.f32 %v756_v7, %v386_v28  ;;  %v769_v56 = vadd.f32 %v747_v46, %v377_v27  ;;  %v1066_v62 = vmul.f32 %v3926_v63, %v1039_v0  ;;  %v4994_v27 = vld [vmem:[#allocation23_spill] sm:$0xff]  ;;  %v4995_v7 = vld [vmem:[#allocation24_spill] sm:$0xff] }
 0x196   :  { %v1067_v58 = vmul.f32 %v3926_v63, %v1040_v8  ;;  %2832 = vrsqrt.f32 %v1034_v23  ;;  %v1393_v31 = vrot.slane %v1392_v32, 4  ;;  %v4161_v41 = vadd.f32 %v757_v51, %v387_v36  ;;  %v4996_v36 = vld [vmem:[#allocation45_spill] sm:$0xff] }
 0x197   :  { %v770_v61 = vadd.f32 %v748_v53, %v378_v2  ;;  %v1093_v24 = vadd.f32 %v3938_v16, %v1066_v62  ;;  %v1407_v15 = vmul.f32 %v4017_v45, %v4992_v26  ;;  %v1408_v28 = vmul.f32 %v4017_v45, %v4993_v59  ;;  %v4997_v53 = vld [vmem:[#allocation46_spill] sm:$0xff] }
 0x198   :  { %v1094_v55 = vadd.f32 %v3938_v16, %v1067_v58  ;;  %v1394_v19 = vadd.f32 %v1393_v31, %v1392_v32  ;;  %v682_v33 = vmul.f32 %v4102_v60, %v4994_v27  ;;  %v683_v46 = vmul.f32 %v4102_v60, %v4995_v7  ;;  %v4998_v7 = vld [vmem:[#allocation55_spill] sm:$0xff] }
 0x199   :  { %v673_v2 = vmul.f32 %v3824_v11, %v4996_v36  ;;  %v1115_v38 = vmul.f32 %v1093_v24, %v3179_v50  ;;  %v1434_v54 = vmul.f32 %v4022_v39, %v1407_v15  ;;  %v1435_v8 = vmul.f32 %v4022_v39, %v1408_v28 }
 0x19a   :  { %v1116_v0 = vmul.f32 %v1094_v55, %v3255_v34  ;;  %v1395_v23 = vrot.slane %v1394_v19, 2  ;;  %v709_v32 = vmul.f32 %v3829_v25, %v682_v33  ;;  %v710_v51 = vmul.f32 %v3829_v25, %v683_v46 }
 0x19b   :  { %v674_v62 = vmul.f32 %v3824_v11, %v4997_v53  ;;  %v1137_v58 = vadd.f32 %v1115_v38, %v769_v56  ;;  %v1461_v26 = vadd.f32 %v4088_v1, %v1434_v54  ;;  %v1462_v24 = vadd.f32 %v4088_v1, %v1435_v8  ;;  %v388_v56 = vld [vmem:[%s4689_s5 + $0x68] sm:$0xff] }
 0x19c   :  { %v1138_v31 = vadd.f32 %v1116_v0, %v770_v61  ;;  %v1396_v59 = vadd.f32 %v1395_v23, %v1394_v19  ;;  %v736_v55 = vadd.f32 %v3844_v44, %v709_v32  ;;  %v737_v15 = vadd.f32 %v3844_v44, %v710_v51  ;;  %v389_v61 = vld [vmem:[%s4689_s5 + $0x70] sm:$0xff]  ;;  %v4999_v32 = vld [vmem:[#allocation56_spill] sm:$0xff] }
 0x19d   :  { %v700_v28 = vmul.f32 %v3829_v25, %v673_v2  ;;  %v1483_v27 = vmul.f32 %v1461_v26, %v4969_v48  ;;  %v1484_v33 = vmul.f32 %v1462_v24, %v4970_v5  ;;  %v701_v19 = vmul.f32 %v3829_v25, %v674_v62 }
 0x19e   :  { %v1041_v46 = vmul.f32 %v3921_v14, %v4998_v7  ;;  %v1397_v36 = vrot.slane %v1396_v59, 1  ;;  %v758_v2 = vmul.f32 %v736_v55, %v3173_v47  ;;  %v759_v38 = vmul.f32 %v737_v15, %v3177_v49  ;;  %v379_v47 = vld [vmem:[%s4689_s5 + $0x20] sm:$0xff] }
 0x19f   :  { %v727_v0 = vadd.f32 %v3844_v44, %v700_v28  ;;  %v1505_v54 = vadd.f32 %v1483_v27, %v1137_v58  ;;  %v1506_v8 = vadd.f32 %v1484_v33, %v1138_v31  ;;  %v728_v23 = vadd.f32 %v3844_v44, %v701_v19  ;;  %v5000_v27 = vld [vmem:[#allocation41_spill] sm:$0xff] }
 0x1a0   :  { %v1042_v51 = vmul.f32 %v3921_v14, %v4999_v32  ;;  %v4205_v53 = vpop.eup %2832  ;;  %v1398_v62 = vadd.f32 %v1397_v36, %v1396_v59  ;;  %v780_v26 = vadd.f32 %v758_v2, %v388_v56  ;;  %v781_v24 = vadd.f32 %v759_v38, %v389_v61  ;;  %v380_v59 = vld [vmem:[%s4689_s5 + $0x28] sm:$0xff] }
 0x1a1   :  { %v749_v49 = vmul.f32 %v727_v0, %v3183_v52  ;;  %v1058_v58 = vmul.f32 %v4205_v53, %v3896_v10  ;;  %v1048_v31 = vmul.f32 %v4205_v53, %v3866_v30  ;;  %v1049_v55 = vmul.f32 %v4205_v53, %v3869_v42  ;;  %v5001_v56 = vld [vmem:[#allocation42_spill] sm:$0xff]  ;;  %v5002_v10 = vld [vmem:[#allocation8_spill] sm:$0xff] }
 0x1a2   :  { %v4217_v15 = vpack.c.bf16 %v1506_v8, %v1505_v54  ;;  %v1400_v28 = vmul.f32 0.25, %v1398_v62  ;;  %v1050_v33 = vmul.f32 %v4205_v53, %v5000_v27  ;;  %v1051_v61 = vmul.f32 %v4205_v53, %v5001_v56 }
 0x1a3   :  { %v750_v19 = vmul.f32 %v728_v23, %v5002_v10  ;;  %v1085_v30 = vmul.f32 %v3926_v63, %v1058_v58  ;;  %v1075_v7 = vmul.f32 %v3926_v63, %v1048_v31  ;;  %v1076_v42 = vmul.f32 %v3926_v63, %v1049_v55 }
 0x1a4   :  { %2700 = vmatpush3.bf16.xpose.msk.msra.mxu0 %vm4117_vm7, %v4217_v15  ;;  %v771_v36 = vadd.f32 %v749_v49, %v379_v47  ;;  %v1402_v2 = vadd.f32 1e-05, %v1400_v28  ;;  %v1077_v38 = vmul.f32 %v3926_v63, %v1050_v33  ;;  %v1078_v0 = vmul.f32 %v3926_v63, %v1051_v61  ;;  %v5003_v28 = vld [vmem:[#allocation66_spill] sm:$0xff]  ;;  %v5004_v61 = vld [vmem:[#allocation67_spill] sm:$0xff] }
 0x1a5   :  { %2701 = vmatprep.subr.bf16.mxu0 %v4991_v13  ;;  %v772_v54 = vadd.f32 %v750_v19, %v380_v59  ;;  %v4237_v8 = vadd.f32 %v3938_v16, %v1085_v30  ;;  %v1102_v23 = vadd.f32 %v3938_v16, %v1075_v7  ;;  %v1103_v32 = vadd.f32 %v3938_v16, %v1076_v42 }
 0x1a6   :  { %v1068_v62 = vmul.f32 %v3926_v63, %v1041_v46  ;;  %2834 = vrsqrt.f32 %v1402_v2  ;;  %v1104_v47 = vadd.f32 %v3938_v16, %v1077_v38  ;;  %v1105_v49 = vadd.f32 %v3938_v16, %v1078_v0 }
 0x1a7   :  { %v1069_v58 = vmul.f32 %v3926_v63, %v1042_v51  ;;  %v1124_v31 = vmul.f32 %v1102_v23, %v4952_v57  ;;  %v1125_v55 = vmul.f32 %v1103_v32, %v3213_v4  ;;  %v1409_v27 = vmul.f32 %v4017_v45, %v5003_v28 }
 0x1a8   :  { %v1095_v59 = vadd.f32 %v3938_v16, %v1068_v62  ;;  %v1126_v33 = vmul.f32 %v1104_v47, %v3179_v50  ;;  %v1127_v46 = vmul.f32 %v1105_v49, %v3255_v34  ;;  %v1410_v19 = vmul.f32 %v4017_v45, %v5004_v61  ;;  %v5005_v34 = vld [vmem:[#allocation12_spill] sm:$0xff]  ;;  %v5009_v49 = vld [vmem:[#allocation74_spill] sm:$0xff] }
 0x1a9   :  { %v1096_v56 = vadd.f32 %v3938_v16, %v1069_v58  ;;  %v4256_v51 = vadd.f32 %v1124_v31, %v4157_v43  ;;  %v4259_v57 = vadd.f32 %v1125_v55, %v4161_v41  ;;  %v1436_v30 = vmul.f32 %v4022_v39, %v1409_v27  ;;  %v5006_v43 = vld [vmem:[#allocation26_spill] sm:$0xff]  ;;  %v5007_v41 = vld [vmem:[#allocation27_spill] sm:$0xff] }
 0x1aa   :  { %v1117_v4 = vmul.f32 %v1095_v59, %v3295_v9  ;;  %v4263_v7 = vadd.f32 %v1126_v33, %v780_v26  ;;  %v4265_v50 = vadd.f32 %v1127_v46, %v781_v24  ;;  %v1437_v2 = vmul.f32 %v4022_v39, %v1410_v19  ;;  %v5008_v26 = vld [vmem:[#allocation73_spill] sm:$0xff]  ;;  %v5010_v59 = vld [vmem:[#allocation47_spill] sm:$0xff]  ;;  %v5011_v46 = vld [vmem:[#allocation48_spill] sm:$0xff] }
 0x1ab   :  { %v1118_v42 = vmul.f32 %v1096_v56, %v5005_v34  ;;  %v1463_v0 = vadd.f32 %v4088_v1, %v1436_v30  ;;  %v684_v23 = vmul.f32 %v4102_v60, %v5006_v43  ;;  %v685_v32 = vmul.f32 %v4102_v60, %v5007_v41  ;;  %v5012_v41 = vld [vmem:[#allocation88_spill] sm:$0xff] }
 0x1ac   :  { %v1139_v38 = vadd.f32 %v1117_v4, %v771_v36  ;;  %v1464_v47 = vadd.f32 %v4088_v1, %v1437_v2  ;;  %v1052_v24 = vmul.f32 %v4205_v53, %v5008_v26  ;;  %v1053_v58 = vmul.f32 %v4205_v53, %v5009_v49  ;;  %v5014_v26 = vld [vmem:[#allocation79_spill] sm:$0xff]  ;;  %v5015_v49 = vld [vmem:[#allocation80_spill] sm:$0xff] }
 0x1ad   :  { %v1140_v62 = vadd.f32 %v1118_v42, %v772_v54  ;;  %v1485_v31 = vmul.f32 %v1463_v0, %v4971_v40  ;;  %v711_v36 = vmul.f32 %v3829_v25, %v684_v23  ;;  %v712_v55 = vmul.f32 %v3829_v25, %v685_v32 }
 0x1ae   :  { %v675_v28 = vmul.f32 %v3824_v11, %v5010_v59  ;;  %v1486_v27 = vmul.f32 %v1464_v47, %v4972_v37  ;;  %v1079_v54 = vmul.f32 %v3926_v63, %v1052_v24  ;;  %v1080_v33 = vmul.f32 %v3926_v63, %v1053_v58  ;;  %v5013_v47 = vld [vmem:[#allocation61_spill] sm:$0xff] }
 0x1af   :  { %v676_v56 = vmul.f32 %v3824_v11, %v5011_v46  ;;  %v1507_v61 = vadd.f32 %v1485_v31, %v1139_v38  ;;  %v738_v19 = vadd.f32 %v3844_v44, %v711_v36  ;;  %v739_v4 = vadd.f32 %v3844_v44, %v712_v55  ;;  %v391_v31 = vld [vmem:[%s4689_s5 + $0x80] sm:$0xff] }
 0x1b0   :  { %v702_v30 = vmul.f32 %v3829_v25, %v675_v28  ;;  %v4292_v42 = vpop.eup %2834  ;;  %v1508_v2 = vadd.f32 %v1486_v27, %v1140_v62  ;;  %v1106_v0 = vadd.f32 %v3938_v16, %v1079_v54  ;;  %v1107_v43 = vadd.f32 %v3938_v16, %v1080_v33  ;;  %v390_v62 = vld [vmem:[%s4689_s5 + $0x78] sm:$0xff]  ;;  %v5016_v36 = vld [vmem:[#allocation81_spill] sm:$0xff] }
 0x1b1   :  { %v703_v23 = vmul.f32 %v3829_v25, %v676_v56  ;;  %v1426_v32 = vmul.f32 %v4292_v42, %v5012_v41  ;;  %v1416_v38 = vmul.f32 %v4292_v42, %v5013_v47  ;;  %v1417_v24 = vmul.f32 %v4292_v42, %v5014_v26  ;;  %v5017_v26 = vld [vmem:[#allocation82_spill] sm:$0xff] }
 0x1b2   :  { %v1418_v58 = vmul.f32 %v4292_v42, %v5015_v49  ;;  %v1419_v55 = vmul.f32 %v4292_v42, %v5016_v36  ;;  %v4313_v59 = vpack.c.bf16 %v1508_v2, %v1507_v61  ;;  %v760_v28 = vmul.f32 %v738_v19, %v3183_v52  ;;  %v5018_v49 = vld [vmem:[#allocation83_spill] sm:$0xff] }
 0x1b3   :  { %v761_v27 = vmul.f32 %v739_v4, %v5002_v10  ;;  %v4318_v54 = vmul.f32 %v4022_v39, %v1426_v32  ;;  %v1443_v33 = vmul.f32 %v4022_v39, %v1416_v38  ;;  %v1444_v46 = vmul.f32 %v4022_v39, %v1417_v24 }
 0x1b4   :  { %v1445_v56 = vmul.f32 %v4022_v39, %v1418_v58  ;;  %v1446_v41 = vmul.f32 %v4022_v39, %v1419_v55  ;;  %2704 = vmatpush3.bf16.xpose.msk.msra.mxu0 %vm4117_vm7, %v4313_v59  ;;  %v782_v61 = vadd.f32 %v760_v28, %v390_v62  ;;  %v1128_v52 = vmul.f32 %v1106_v0, %v3295_v9 }
 0x1b5   :  { %v783_v2 = vadd.f32 %v761_v27, %v391_v31  ;;  %v1470_v10 = vadd.f32 %v4088_v1, %v1443_v33  ;;  %v1471_v19 = vadd.f32 %v4088_v1, %v1444_v46  ;;  %v1129_v32 = vmul.f32 %v1107_v43, %v5005_v34  ;;  %2705 = vmatprep.subr.bf16.mxu0 %v4991_v13 }
 0x1b6   :  { %v1472_v4 = vadd.f32 %v4088_v1, %v1445_v56  ;;  %v1473_v47 = vadd.f32 %v4088_v1, %v1446_v41  ;;  %v1150_v38 = vadd.f32 %v1128_v52, %v782_v61  ;;  %v1420_v24 = vmul.f32 %v4292_v42, %v5017_v26  ;;  %v5021_v61 = vld [vmem:[#allocation57_spill] sm:$0xff] }
 0x1b7   :  { %v1421_v58 = vmul.f32 %v4292_v42, %v5018_v49  ;;  %v1492_v9 = vmul.f32 %v1470_v10, %v4967_v3  ;;  %v1493_v0 = vmul.f32 %v1471_v19, %v4968_v6  ;;  %v1151_v31 = vadd.f32 %v1129_v32, %v783_v2  ;;  %v381_v6 = vld [vmem:[%s4689_s5 + $0x30] sm:$0xff] }
 0x1b8   :  { %v1494_v62 = vmul.f32 %v1472_v4, %v4969_v48  ;;  %v1495_v34 = vmul.f32 %v1473_v47, %v4970_v5  ;;  %v1447_v43 = vmul.f32 %v4022_v39, %v1420_v24  ;;  %v729_v55 = vadd.f32 %v3844_v44, %v702_v30  ;;  %v5019_v30 = vld [vmem:[#allocation9_spill] sm:$0xff]  ;;  %v5023_v24 = vld [vmem:[#allocation68_spill] sm:$0xff] }
 0x1b9   :  { %v1448_v36 = vmul.f32 %v4022_v39, %v1421_v58  ;;  %v1514_v28 = vadd.f32 %v1492_v9, %v4256_v51  ;;  %v1515_v27 = vadd.f32 %v1493_v0, %v4259_v57  ;;  %v730_v3 = vadd.f32 %v3844_v44, %v703_v23  ;;  %v382_v51 = vld [vmem:[%s4689_s5 + $0x38] sm:$0xff]  ;;  %v5022_v23 = vld [vmem:[#allocation58_spill] sm:$0xff] }
 0x1ba   :  { %v1516_v33 = vadd.f32 %v1494_v62, %v4263_v7  ;;  %v1517_v5 = vadd.f32 %v1495_v34, %v4265_v50  ;;  %v1474_v48 = vadd.f32 %v4088_v1, %v1447_v43  ;;  %v751_v57 = vmul.f32 %v729_v55, %v5019_v30  ;;  %v5020_v7 = vld [vmem:[#allocation11_spill] sm:$0xff]  ;;  %v5025_v0 = vld [vmem:[#allocation30_spill] sm:$0xff] }
 0x1bb   :  { %v1475_v46 = vadd.f32 %v4088_v1, %v1448_v36  ;;  %v4359_v56 = vpack.c.bf16 %v1515_v27, %v1514_v28  ;;  %v752_v41 = vmul.f32 %v730_v3, %v5020_v7  ;;  %v1043_v2 = vmul.f32 %v3921_v14, %v5021_v61  ;;  %v5026_v55 = vld [vmem:[#allocation31_spill] sm:$0xff]  ;;  %v5028_v3 = vld [vmem:[#allocation16_spill] sm:$0xff] }
 0x1bc   :  { %v1044_v50 = vmul.f32 %v3921_v14, %v5022_v23  ;;  %v4366_v52 = vpack.c.bf16 %v1517_v5, %v1516_v33  ;;  %v1496_v10 = vmul.f32 %v1474_v48, %v4971_v40  ;;  %v773_v4 = vadd.f32 %v751_v57, %v381_v6  ;;  %v5024_v40 = vld [vmem:[#allocation69_spill] sm:$0xff]  ;;  %v5027_v33 = vld [vmem:[#allocation75_spill] sm:$0xff] }
 0x1bd   :  { %v1497_v19 = vmul.f32 %v1475_v46, %v4972_v37  ;;  %2716 = vmatpush3.bf16.xpose.msk.msra.mxu1 %vm4117_vm7, %v4359_v56  ;;  %v774_v32 = vadd.f32 %v752_v41, %v382_v51  ;;  %v1070_v47 = vmul.f32 %v3926_v63, %v1043_v2  ;;  %v1411_v49 = vmul.f32 %v4017_v45, %v5023_v24  ;;  %v5029_v48 = vld [vmem:[#allocation19_spill] sm:$0xff]  ;;  %v5030_v2 = vld [vmem:[#allocation76_spill] sm:$0xff] }
 0x1be   :  { %v1071_v26 = vmul.f32 %v3926_v63, %v1044_v50  ;;  %2717 = vmatprep.subr.bf16.mxu1 %v4991_v13  ;;  %v1518_v58 = vadd.f32 %v1496_v10, %v1150_v38  ;;  %v1412_v37 = vmul.f32 %v4017_v45, %v5024_v40  ;;  %v686_v62 = vmul.f32 %v4102_v60, %v5025_v0  ;;  %v5031_v0 = vld [vmem:[#allocation84_spill] sm:$0xff] }
 0x1bf   :  { %v1519_v9 = vadd.f32 %v1497_v19, %v1151_v31  ;;  %v1097_v34 = vadd.f32 %v3938_v16, %v1070_v47  ;;  %v1438_v36 = vmul.f32 %v4022_v39, %v1411_v49  ;;  %v687_v28 = vmul.f32 %v4102_v60, %v5026_v55 }
 0x1c0   :  { %v1098_v43 = vadd.f32 %v3938_v16, %v1071_v26  ;;  %v1439_v38 = vmul.f32 %v4022_v39, %v1412_v37  ;;  %v713_v31 = vmul.f32 %v3829_v25, %v686_v62  ;;  %v1054_v6 = vmul.f32 %v4205_v53, %v5027_v33  ;;  %v392_v26 = vld [vmem:[%s4689_s5 + $0x88] sm:$0xff] }
 0x1c1   :  { %v4387_v27 = vpack.c.bf16 %v1519_v9, %v1518_v58  ;;  %v1119_v5 = vmul.f32 %v1097_v34, %v5028_v3  ;;  %v1465_v51 = vadd.f32 %v4088_v1, %v1438_v36  ;;  %v714_v57 = vmul.f32 %v3829_v25, %v687_v28  ;;  %v393_v58 = vld [vmem:[%s4689_s5 + $0x90] sm:$0xff]  ;;  %v5032_v34 = vld [vmem:[#allocation85_spill] sm:$0xff] }
 0x1c2   :  { %v1120_v46 = vmul.f32 %v1098_v43, %v5029_v48  ;;  %v1466_v41 = vadd.f32 %v4088_v1, %v1439_v38  ;;  %v740_v61 = vadd.f32 %v3844_v44, %v713_v31  ;;  %v1055_v23 = vmul.f32 %v4205_v53, %v5030_v2 }
 0x1c3   :  { %v1081_v50 = vmul.f32 %v3926_v63, %v1054_v6  ;;  %v1141_v10 = vadd.f32 %v1119_v5, %v773_v4  ;;  %v1487_v47 = vmul.f32 %v1465_v51, %v4973_v20  ;;  %v741_v24 = vadd.f32 %v3844_v44, %v714_v57  ;;  %v5034_v57 = vld [vmem:[#allocation50_spill] sm:$0xff] }
 0x1c4   :  { %v1142_v19 = vadd.f32 %v1120_v46, %v774_v32  ;;  %v1488_v49 = vmul.f32 %v1466_v41, %v4974_v18  ;;  %v762_v9 = vmul.f32 %v740_v61, %v5019_v30  ;;  %v1082_v40 = vmul.f32 %v3926_v63, %v1055_v23  ;;  %v5035_v23 = vld [vmem:[#allocation59_spill] sm:$0xff] }
 0x1c5   :  { %v1108_v4 = vadd.f32 %v3938_v16, %v1081_v50  ;;  %2720 = vmatpush3.bf16.xpose.msk.msra.mxu1 %vm4117_vm7, %v4366_v52  ;;  %v1509_v32 = vadd.f32 %v1487_v47, %v1141_v10  ;;  %v763_v37 = vmul.f32 %v741_v24, %v5020_v7  ;;  %v1422_v62 = vmul.f32 %v4292_v42, %v5031_v0  ;;  %v5033_v7 = vld [vmem:[#allocation49_spill] sm:$0xff] }
 0x1c6   :  { %v1423_v43 = vmul.f32 %v4292_v42, %v5032_v34  ;;  %2721 = vmatprep.subr.bf16.mxu1 %v4991_v13  ;;  %v1510_v30 = vadd.f32 %v1488_v49, %v1142_v19  ;;  %v784_v36 = vadd.f32 %v762_v9, %v392_v26  ;;  %v1109_v55 = vadd.f32 %v3938_v16, %v1082_v40  ;;  %v5036_v19 = vld [vmem:[#allocation60_spill] sm:$0xff]  ;;  %v5039_v34 = vld [vmem:[#allocation18_spill] sm:$0xff] }
 0x1c7   :  { %v1130_v28 = vmul.f32 %v1108_v4, %v5028_v3  ;;  %v785_v38 = vadd.f32 %v763_v37, %v393_v58  ;;  %v1449_v31 = vmul.f32 %v4022_v39, %v1422_v62  ;;  %v677_v6 = vmul.f32 %v3824_v11, %v5033_v7  ;;  %v383_v40 = vld [vmem:[%s4689_s5 + $0x40] sm:$0xff]  ;;  %v384_v62 = vld [vmem:[%s4689_s5 + $0x48] sm:$0xff] }
 0x1c8   :  { %v1450_v33 = vmul.f32 %v4022_v39, %v1423_v43  ;;  %v4429_v5 = vpack.c.bf16 %v1510_v30, %v1509_v32  ;;  %v1131_v46 = vmul.f32 %v1109_v55, %v5029_v48  ;;  %v678_v41 = vmul.f32 %v3824_v11, %v5034_v57  ;;  %v5037_v11 = vld [vmem:[#allocation70_spill] sm:$0xff]  ;;  %v5038_v32 = vld [vmem:[#allocation71_spill] sm:$0xff]  ;;  %v5041_v7 = vld [vmem:[#allocation28_spill] sm:$0xff] }
 0x1c9   :  { %v1152_v51 = vadd.f32 %v1130_v28, %v784_v36  ;;  %v1476_v61 = vadd.f32 %v4088_v1, %v1449_v31  ;;  %v704_v2 = vmul.f32 %v3829_v25, %v677_v6  ;;  %v1045_v50 = vmul.f32 %v3921_v14, %v5035_v23  ;;  %v5040_v36 = vld [vmem:[#allocation22_spill] sm:$0xff] }
 0x1ca   :  { %v1477_v3 = vadd.f32 %v4088_v1, %v1450_v33  ;;  %2708 = vmatpush3.bf16.xpose.msk.msra.mxu0 %vm4117_vm7, %v4429_v5  ;;  %v1153_v10 = vadd.f32 %v1131_v46, %v785_v38  ;;  %v705_v48 = vmul.f32 %v3829_v25, %v678_v41  ;;  %v1046_v47 = vmul.f32 %v3921_v14, %v5036_v19  ;;  %v5042_v46 = vld [vmem:[#allocation34_spill] sm:$0xff]  ;;  %v5043_v41 = vld [vmem:[#allocation32_spill] sm:$0xff]  ;;  %v5045_v19 = vld [vmem:[#allocation77_spill] sm:$0xff] }
 0x1cb   :  { %v1413_v26 = vmul.f32 %v4017_v45, %v5037_v11  ;;  %v1498_v24 = vmul.f32 %v1476_v61, %v4973_v20  ;;  %2709 = vmatprep.subr.bf16.mxu0 %v4991_v13  ;;  %v731_v58 = vadd.f32 %v3844_v44, %v704_v2  ;;  %v1072_v9 = vmul.f32 %v3926_v63, %v1045_v50  ;;  %v5044_v50 = vld [vmem:[#allocation35_spill] sm:$0xff] }
 0x1cc   :  { %v1499_v49 = vmul.f32 %v1477_v3, %v4974_v18  ;;  %v732_v4 = vadd.f32 %v3844_v44, %v705_v48  ;;  %v1073_v14 = vmul.f32 %v3926_v63, %v1046_v47  ;;  %v1414_v37 = vmul.f32 %v4017_v45, %v5038_v32 }
 0x1cd   :  { %v1440_v20 = vmul.f32 %v4022_v39, %v1413_v26  ;;  %2724 = vmatpush3.bf16.xpose.msk.msra.mxu1 %vm4117_vm7, %v4387_v27  ;;  %v1520_v18 = vadd.f32 %v1498_v24, %v1152_v51  ;;  %v753_v43 = vmul.f32 %v731_v58, %v5039_v34  ;;  %v1099_v30 = vadd.f32 %v3938_v16, %v1072_v9  ;;  %v5046_v24 = vld [vmem:[#allocation78_spill] sm:$0xff] }
 0x1ce   :  { %v1521_v0 = vadd.f32 %v1499_v49, %v1153_v10  ;;  %2725 = vmatprep.subr.bf16.mxu1 %v4991_v13  ;;  %v754_v45 = vmul.f32 %v732_v4, %v5040_v36  ;;  %v1100_v55 = vadd.f32 %v3938_v16, %v1073_v14  ;;  %v1441_v28 = vmul.f32 %v4022_v39, %v1414_v37  ;;  %v5047_v58 = vld [vmem:[#allocation86_spill] sm:$0xff]  ;;  %v394_v37 = vld [vmem:[%s4689_s5 + $0x98] sm:$0xff] }
 0x1cf   :  { %v1467_v38 = vadd.f32 %v4088_v1, %v1440_v20  ;;  %v775_v33 = vadd.f32 %v753_v43, %v383_v40  ;;  %v1121_v6 = vmul.f32 %v1099_v30, %v5041_v7  ;;  %v688_v51 = vmul.f32 %v4102_v60, %v5042_v46 }
 0x1d0   :  { %v4473_v31 = vpack.c.bf16 %v1521_v0, %v1520_v18  ;;  %v776_v57 = vadd.f32 %v754_v45, %v384_v62  ;;  %v1122_v61 = vmul.f32 %v1100_v55, %v5043_v41  ;;  %v1468_v3 = vadd.f32 %v4088_v1, %v1441_v28  ;;  %v5048_v18 = vld [vmem:[#allocation87_spill] sm:$0xff]  ;;  %v5050_v45 = vld [vmem:[#allocation40_spill] sm:$0xff] }
 0x1d1   :  { %v1489_v2 = vmul.f32 %v1467_v38, %v4975_v17  ;;  %v1143_v23 = vadd.f32 %v1121_v6, %v775_v33  ;;  %v689_v10 = vmul.f32 %v4102_v60, %v5044_v50  ;;  %v715_v48 = vmul.f32 %v3829_v25, %v688_v51  ;;  %v395_v28 = vld [vmem:[%s4689_s5 + $0xa0] sm:$0xff] }
 0x1d2   :  { %v1056_v47 = vmul.f32 %v4205_v53, %v5045_v19  ;;  %v1144_v11 = vadd.f32 %v1122_v61, %v776_v57  ;;  %v1490_v26 = vmul.f32 %v1468_v3, %v4976_v21  ;;  %v1057_v49 = vmul.f32 %v4205_v53, %v5046_v24  ;;  %v5054_v24 = vld [vmem:[#allocation39_spill] sm:$0xff] }
 0x1d3   :  { %v1424_v9 = vmul.f32 %v4292_v42, %v5047_v58  ;;  %v1511_v40 = vadd.f32 %v1489_v2, %v1143_v23  ;;  %v716_v4 = vmul.f32 %v3829_v25, %v689_v10  ;;  %v742_v14 = vadd.f32 %v3844_v44, %v715_v48  ;;  %v385_v25 = vld [vmem:[%s4689_s5 + $0x50] sm:$0xf]  ;;  %v5052_v2 = vld [vmem:[#allocation5_spill] sm:$0xff] }
 0x1d4   :  { %v1083_v60 = vmul.f32 %v3926_v63, %v1056_v47  ;;  %v1512_v32 = vadd.f32 %v1490_v26, %v1144_v11  ;;  %v1084_v20 = vmul.f32 %v3926_v63, %v1057_v49  ;;  %v1425_v53 = vmul.f32 %v4292_v42, %v5048_v18  ;;  %v5049_v63 = vld [vmem:[#allocation29_spill] sm:$0xff] }
 0x1d5   :  { %v1451_v0 = vmul.f32 %v4022_v39, %v1424_v9  ;;  %2728 = vmatpush3.bf16.xpose.msk.msra.mxu1 %vm4117_vm7, %v4473_v31  ;;  %v743_v62 = vadd.f32 %v3844_v44, %v716_v4  ;;  %v764_v43 = vmul.f32 %v742_v14, %v5039_v34  ;;  %v755_v55 = vmul.f32 %v5050_v45, %v5049_v63 }
 0x1d6   :  { %v1110_v30 = vadd.f32 %v3938_v16, %v1083_v60  ;;  %2729 = vmatprep.subr.bf16.mxu1 %v4991_v13  ;;  %v2710_v42 = vpack.c.bf16 %v1512_v32, %v1511_v40  ;;  %v1111_v38 = vadd.f32 %v3938_v16, %v1084_v20  ;;  %v1452_v33 = vmul.f32 %v4022_v39, %v1425_v53  ;;  %v5051_v16 = vld [vmem:[#allocation36_spill] sm:$0xff] }
 0x1d7   :  { %v1478_v44 = vadd.f32 %v4088_v1, %v1451_v0  ;;  %v765_v34 = vmul.f32 %v743_v62, %v5040_v36  ;;  %v786_v6 = vadd.f32 %v764_v43, %v394_v37  ;;  %v777_v51 = vadd.f32 %v755_v55, %v385_v25  ;;  %v396_v36 = vld [vmem:[%s4689_s5 + $0xa8] sm:$0xf] }
 0x1d8   :  { %v1132_v46 = vmul.f32 %v1110_v30, %v5041_v7  ;;  %2712 = vmatpush3.bf16.xpose.msk.msra.mxu0 %vm4117_vm7, %v2710_v42  ;;  %v1133_v57 = vmul.f32 %v1111_v38, %v5043_v41  ;;  %v1479_v61 = vadd.f32 %v4088_v1, %v1452_v33  ;;  %v1123_v39 = vmul.f32 %v5052_v2, %v5051_v16  ;;  %v1933_v2 = vld [vmem:[%s4692_s8 + $0x10] sm:$0xff] }
 0x1d9   :  { %v1500_v3 = vmul.f32 %v1478_v44, %v4975_v17  ;;  %v787_v23 = vadd.f32 %v765_v34, %v395_v28  ;;  %v5053_v7 = vmov 0.0   ;;  %v1469_v10 = vadd.f32 %v4088_v1, %v4041_v29 }
 0x1da   :  { %v1154_v50 = vadd.f32 %v1132_v46, %v786_v6  ;;  %2549 = vmatprep.subr.mxu0 %v5053_v7  ;;  %v766_v41 = vmul.f32 %v4124_v22, %v5049_v63  ;;  %v1501_v48 = vmul.f32 %v1479_v61, %v4976_v21  ;;  %v1145_v17 = vadd.f32 %v1123_v39, %v777_v51  ;;  %v1934_v39 = vld [vmem:[%s4692_s8 + $0x18] sm:$0xff] }
 0x1db   :  { %v1134_v19 = vmul.f32 %v4237_v8, %v5051_v16  ;;  %v1480_v47 = vadd.f32 %v4088_v1, %v4318_v54  ;;  %v1155_v11 = vadd.f32 %v1133_v57, %v787_v23  ;;  %v1491_v49 = vmul.f32 %v1469_v10, %v5054_v24  ;;  %v1525_v1 = vld [vmem:[%s4691_s7] sm:$0xf] }
 0x1dc   :  { %v1522_v26 = vadd.f32 %v1500_v3, %v1154_v50  ;;  %v788_v58 = vadd.f32 %v766_v41, %v396_v36  ;;  %v1743_v35 = vlaneseq  ;;  %v2767_v36 = vpack.c.bf16 %v1934_v39, %v1933_v2  ;;  %v2019_v10 = vld [vmem:[%s4692_s8 + $0x20] sm:$0xff]  ;;  %v2020_v41 = vld [vmem:[%s4692_s8 + $0x28] sm:$0xff] }
 0x1dd   :  { %v1523_v9 = vadd.f32 %v1501_v48, %v1155_v11  ;;  %v1513_v40 = vadd.f32 %v1491_v49, %v1145_v17  ;;  %v1502_v4 = vmul.f32 %v1480_v47, %v5054_v24  ;;  %v2770_v11 = vpack.c.bf16 %v2020_v41, %v2019_v10 }
 0x1de   :  { %v1156_v29 = vadd.f32 %v1134_v19, %v788_v58 }
 0x1df   :  { %v4543_v22 = vpack.c.bf16 %v1523_v9, %v1522_v26 }
 0x1e0   :  { %v4545_v21 = vadd.f32 %v1502_v4, %v1156_v29  ;;  %2550 = vmatpush3.xpose.msk.msra.mxu0 %vm485_vm5, %v1513_v40  ;;  %v2022_v29 = vld [vmem:[%s4692_s8 + $0x38] sm:$0xff] }
 0x1e1   :  { %2732 = vmatpush3.bf16.xpose.msk.msra.mxu1 %vm4117_vm7, %v4543_v22  ;;  %2763 = vmatprep.subr.bf16.mxu0 %v4991_v13 }
 0x1e2   :  { %2574 = vmatprep.subr.mxu1 %v5053_v7 }
 0x1e3   :  { %2552 = vmatmul.mubr.msk.f32.vlgmr.msra.gmra.mrb[22].mxu0 %vm485_vm5, %v1525_v1 }
 0x1e4   :  { %2637 = vmatprep.mubr.msk.f32.mxu0 %vm2869_vm0, %v5053_v7 }
 0x1e9   :  { %2575 = vmatpush3.xpose.msk.msra.mxu1 %vm485_vm5, %v4545_v21 }
 0x1ea   :  { %2733 = vmatprep.subr.bf16.mxu1 %v4991_v13 }
 0x1ec   :  { %2577 = vmatmul.mubr.msk.f32.vlgmr.msra.gmra.mrb[22].mxu1 %vm485_vm5, %v1525_v1 }
 0x1ed   :  { %2735 = vmatpush3.bf16.msra.mxu1 %v4126_v12  ;;  %2601 = vmatprep.mubr.msk.f32.mxu1 %vm2869_vm0, %v5053_v7  ;;  %v1737_v12 = vld [vmem:[%s4690_s6] sm:$0x1] }
 0x1ee   :  { %2736 = vmatprep.subr.bf16.mxu1 %v4991_v13  ;;  %vm1739_vm9 = vcmp.gt.f32.partialorder %v1737_v12, 0.5  ;;  %v2099_v12 = vld [vmem:[%s4692_s8 + $0x48] sm:$0xff] }
 0x1f1   :  { %2738 = vmatpush3.bf16.msra.mxu1 %v4217_v15  ;;  %v1744_v15 = vshrl.u32 %v1743_v35, 7  ;;  %v2098_v35 = vld [vmem:[%s4692_s8 + $0x40] sm:$0xff] }
 0x1f2   :  { %2739 = vmatprep.subr.bf16.mxu1 %v4991_v13 }
 0x1f3   :  { %v1745_v8 = vsub.s32 0, %v1744_v15  ;;  %v2776_v15 = vpack.c.bf16 %v2099_v12, %v2098_v35 }
 0x1f5   :  { %2741 = vmatpush3.bf16.msra.mxu1 %v4313_v59  ;;  %v5055_v59 = vmov 0  }
 0x1f6   :  { %2742 = vmatprep.subr.bf16.mxu1 %v4991_v13  ;;  %v1741_v54 = vsel %vm1739_vm9, 1, %v5055_v59 }
 0x1f7   :  { %v1746_v14 = vrot.slane %v1741_v54, %v1745_v8 }
 0x1f9   :  { %2744 = vmatpush3.bf16.msra.mxu1 %v4429_v5  ;;  %v1738_v5 = vld [vmem:[%s4690_s6 + $0x1] sm:$0x1]  ;;  %vm1751_vm11 = vcmp.eq.s32.totalorder %v1746_v14, 1  ;;  %v2179_v14 = vld [vmem:[%s4692_s8 + $0x68] sm:$0xff] }
 0x1fa   :  { %2745 = vmatprep.subr.bf16.mxu1 %v4991_v13  ;;  %vm1740_vm10 = vcmp.gt.f32.partialorder %v1738_v5, 0.5  ;;  %v2178_v5 = vld [vmem:[%s4692_s8 + $0x60] sm:$0xff] }
 0x1fb   :  { %v1742_v20 = vsel %vm1740_vm10, 1, %v5055_v59  ;;  %v2101_v59 = vld [vmem:[%s4692_s8 + $0x58] sm:$0xff] }
 0x1fc   :  { %v1750_v0 = vrot.slane %v1742_v20, %v1745_v8  ;;  %v2100_v8 = vld [vmem:[%s4692_s8 + $0x50] sm:$0xff] }
 0x1fd   :  { %2747 = vmatpush3.bf16.msra.mxu1 %v2710_v42  ;;  %v2779_v54 = vpack.c.bf16 %v2101_v59, %v2100_v8 }
 0x1fe   :  { %2599 = vmatprep.subr.mxu1 %v5053_v7  ;;  %vm1752_vm13 = vcmp.eq.s32.totalorder %v1750_v0, 1 }
 0x201   :  { %2600 = vmatpush3.msk.msra.mxu1 %vm1782_vm8, %v1513_v40  ;;  %v2021_v40 = vld [vmem:[%s4692_s8 + $0x30] sm:$0xff] }
 0x202   :  { %2748 = vmatprep.subr.bf16.mxu1 %v4991_v13  ;;  %v2773_v1 = vpack.c.bf16 %v2022_v29, %v2021_v40 }
 0x2b6   :  { %v1628_v60 = vpop.f32.mrb[22].mxu0 }
 0x2b7   :  { %v1735_v32 = vmul.f32 0.17677669, %v1628_v60  ;;  %v2553_v37 = vpop.f32.mrb[23].mxu0  ;;  %v2782_v60 = vpack.c.bf16 %v2179_v14, %v2178_v5 }
 0x2b8   :  { %v2181_v37 = vld [vmem:[%s4692_s8 + $0x78] sm:$0xff] }
 0x2b9   :  { %v1753_v18 = vsel %vm1751_vm11, -1e+09, %v1735_v32  ;;  %v2180_v32 = vld [vmem:[%s4692_s8 + $0x70] sm:$0xff] }
 0x2ba   :  { %v1756_v53 = vsel %vm1755_vm12, %v1753_v18, -inf  ;;  %v2785_v20 = vpack.c.bf16 %v2181_v37, %v2180_v32 }
 0x2bb   :  { %1757 = vmax.xlane.f32.xlu1 %v1756_v53 }
 0x2bf   :  { %v1731_v25 = vpop.f32.mrb[22].mxu1 }
 0x2c0   :  { %v1736_v62 = vmul.f32 0.17677669, %v1731_v25  ;;  %v2578_v43 = vpop.f32.mrb[23].mxu1 }
 0x2c2   :  { %v1754_v30 = vsel %vm1752_vm13, -1e+09, %v1736_v62 }
 0x2c3   :  { %v1759_v63 = vsel %vm1755_vm12, %v1754_v30, -inf }
 0x2c4   :  { %1760 = vmax.xlane.f32.xlu0 %v1759_v63 }
 0x348   :  { %v1758_v45 = vpop.xlane.xlu1 %1757 }
 0x349   :  { %v1762_v55 = vsub.f32 %v1753_v18, %v1758_v45  ;;  %v2333_v18 = vld [vmem:[%s4693_s9] ss:$0 sm:$0xff] }
 0x34b   :  { %v1764_v42 = vmul.f32 1.442695, %v1762_v55 }
 0x34d   :  { %2836 = vpow2.f32 %v1764_v42 }
 0x351   :  { %v1761_v28 = vpop.xlane.xlu0 %1760 }
 0x352   :  { %v1763_v38 = vsub.f32 %v1754_v30, %v1761_v28 }
 0x354   :  { %v1766_v33 = vmul.f32 1.442695, %v1763_v38 }
 0x356   :  { %2838 = vpow2.f32 %v1766_v33 }
 0x357   :  { %v2837_v44 = vpop.eup %2836 }
 0x358   :  { %v1768_v34 = vsel %vm1755_vm12, %v2837_v44, 0.0 }
 0x359   :  { %1769 = vadd.xlane.f32.xlu1 %v1768_v34 }
 0x360   :  { %v2839_v6 = vpop.eup %2838 }
 0x361   :  { %v1771_v46 = vsel %vm1755_vm12, %v2839_v6, 0.0 }
 0x362   :  { %1772 = vadd.xlane.f32.xlu0 %v1771_v46 }
 0x3e6   :  { %v1770_v51 = vpop.xlane.xlu1 %1769 }
 0x3e7   :  { %2840 = vrcp.f32 %v1770_v51 }
 0x3ef   :  { %v1773_v3 = vpop.xlane.xlu0 %1772 }
 0x3f0   :  { %2842 = vrcp.f32 %v1773_v3 }
 0x3f1   :  { %v2841_v57 = vpop.eup %2840 }
 0x3f2   :  { %v1776_v61 = vmul.f32 %v2841_v57, %v2837_v44 }
 0x3f4   :  { %2602 = vmatmul.mubr.msk.f32.vlgmr.msra.gmra.mrb[24].mxu1 %vm1778_vm14, %v1776_v61 }
 0x3f5   :  { %2750 = vmatpush3.bf16.msra.mxu1 %v4359_v56  ;;  %2626 = vmatprep.mubr.msk.f32.mxu1 %vm2869_vm0, %v5053_v7 }
 0x3f6   :  { %2751 = vmatprep.subr.bf16.mxu1 %v4991_v13 }
 0x3f9   :  { %2753 = vmatpush3.bf16.msra.mxu1 %v4366_v52  ;;  %v1931_v52 = vld [vmem:[%s4692_s8] sm:$0xff] }
 0x3fa   :  { %2754 = vmatprep.subr.bf16.mxu1 %v4991_v13  ;;  %v2843_v56 = vpop.eup %2842 }
 0x3fb   :  { %v1777_v16 = vmul.f32 %v2843_v56, %v2839_v6 }
 0x3fd   :  { %2756 = vmatpush3.bf16.msra.mxu1 %v4387_v27  ;;  %v1932_v27 = vld [vmem:[%s4692_s8 + $0x8] sm:$0xff]  ;;  %s2844_s8 = scalar_lea.vmem %s2267_s4, 32 }
 0x3fe   :  { %2757 = vmatprep.subr.bf16.mxu1 %v4991_v13  ;;  %p2845_p0 = scmp.ne.s32.totalorder %s2267_s4, %s2844_s8  ;;  %p2850_p2 = scmp.lt.s32.totalorder %s2844_s8, %s2844_s8 }
 0x400   :  { %p2851_p3 = por %p2850_p2, %p2849_p1 }
 0x401   :  { %2759 = vmatpush3.bf16.msra.mxu1 %v4473_v31  ;;  %v2764_v31 = vpack.c.bf16 %v1932_v27, %v1931_v52 }
 0x402   :  { %2760 = vmatprep.subr.bf16.mxu1 %v4991_v13  ;;  %p2852_p4 = pnand %p2851_p3, %p2845_p0 }
 0x403   :  { %2765 = vmatpush3.bf16.msra.mxu0 %v2764_v31 }
 0x404   :  { %2766 = vmatprep.subr.bf16.mxu0 %v4991_v13 }
 0x405   :  { %2762 = vmatpush3.bf16.msra.mxu1 %v4543_v22 }
 0x406   :  { %2624 = vmatprep.subr.mxu1 %v5053_v7 }
 0x407   :  { %2768 = vmatpush3.bf16.msra.mxu0 %v2767_v36 }
 0x408   :  { %2769 = vmatprep.subr.bf16.mxu0 %v4991_v13 }
 0x409   :  { %2625 = vmatpush3.msk.msra.mxu1 %vm1782_vm8, %v4545_v21 }
 0x40a   :  { %2627 = vmatmul.mubr.msk.f32.vlgmr.msra.gmra.mrb[26].mxu1 %vm1778_vm14, %v1777_v16 }
 0x4c7   :  { %v1851_v23 = vpop.f32.mrb[24].mxu1 }
 0x4c8   :  { %v2603_v50 = vpop.f32.mrb[25].mxu1  ;;  %v2023_v48 = vrot.slane %v1851_v23, 1  ;;  %v2102_v17 = vrot.slane %v1851_v23, 2  ;;  %v2182_v19 = vrot.slane %v1851_v23, 3 }
 0x4dd   :  { %v1926_v47 = vpop.f32.mrb[26].mxu1 }
 0x4de   :  { %v1937_v26 = vrot.slane %v1926_v47, 7  ;;  %v2103_v24 = vrot.slane %v1926_v47, 1  ;;  %v2183_v49 = vrot.slane %v1926_v47, 2  ;;  %v2628_v58 = vpop.f32.mrb[27].mxu1  ;;  %v2024_v9 = vsel %vm1938_vm15, %v1926_v47, %v2023_v48 }
 0x4e0   :  { %v1939_v4 = vsel %vm1938_vm15, %v1937_v26, %v1851_v23  ;;  %v2104_v22 = vsel %vm1938_vm15, %v2103_v24, %v2102_v17  ;;  %v2184_v21 = vsel %vm1938_vm15, %v2183_v49, %v2182_v19 }
 0x4e1   :  { %2638 = vmatmul.mubr.msk.f32.vlgmr.msra.gmra.mrb[24].mxu0 %vm485_vm5, %v1939_v4 }
 0x4e2   :  { %2771 = vmatpush3.bf16.msra.mxu0 %v2770_v11  ;;  %2648 = vmatprep.mubr.msk.f32.mxu0 %vm2869_vm0, %v5053_v7 }
 0x4e3   :  { %2772 = vmatprep.subr.bf16.mxu0 %v4991_v13 }
 0x4e6   :  { %2774 = vmatpush3.bf16.msra.mxu0 %v2773_v1 }
 0x4e7   :  { %2775 = vmatprep.subr.bf16.mxu0 %v4991_v13 }
 0x4e9   :  { %2649 = vmatmul.mubr.msk.f32.vlgmr.msra.gmra.mrb[24].mxu0 %vm485_vm5, %v2024_v9 }
 0x4ea   :  { %2777 = vmatpush3.bf16.msra.mxu0 %v2776_v15  ;;  %2659 = vmatprep.mubr.msk.f32.mxu0 %vm2869_vm0, %v5053_v7 }
 0x4eb   :  { %2778 = vmatprep.subr.bf16.mxu0 %v4991_v13 }
 0x4ee   :  { %2780 = vmatpush3.bf16.msra.mxu0 %v2779_v54 }
 0x4ef   :  { %2781 = vmatprep.subr.bf16.mxu0 %v4991_v13 }
 0x4f1   :  { %2660 = vmatmul.mubr.msk.f32.vlgmr.msra.gmra.mrb[24].mxu0 %vm485_vm5, %v2104_v22 }
 0x4f2   :  { %2783 = vmatpush3.bf16.msra.mxu0 %v2782_v60  ;;  %2670 = vmatprep.mubr.msk.f32.mxu0 %vm2869_vm0, %v5053_v7 }
 0x4f3   :  { %2784 = vmatprep.subr.bf16.mxu0 %v4991_v13 }
 0x4f6   :  { %2786 = vmatpush3.bf16.msra.mxu0 %v2785_v20 }
 0x4f9   :  { %2671 = vmatmul.mubr.msk.f32.vlgmr.msra.gmra.mrb[24].mxu0 %vm485_vm5, %v2184_v21 }
 0x5cc   :  { %v2253_v53 = vpop.f32.mrb[24].mxu0 }
 0x5cd   :  { %v2787_v0 = vadd.f32 %v2333_v18, %v2253_v53  ;;  %v2672_v25 = vpop.f32.mrb[25].mxu0 }
 0x5cf   :  { %2259 = vst.msk [vmem:[#allocation2] sm:$0x3] %vm2258_vm1, %v2787_v0 }
 0x5d0   :  { %2855 = shalt.err (!%p2852_p4)
}
 0x5d1   :  { %s2856_s22 = scalar_lea.hbm %s4694_s10, 32 }
 0x5d2   :  { %p2857_p5 = scmp.ne.s32.totalorder %s4694_s10, %s2856_s22  ;;  %p2860_p6 = scmp.lt.u32.totalorder %s2856_s22, %s4694_s10 }
 0x5d4   :  { %p2862_p7 = pnand %p2860_p6, %p2857_p5 }
 0x5d6   :  { %2865 = shalt.err (!%p2862_p7)
}
 0x5d7   :  { %2269 = dma.vmem_to_hbm [thread:$0]  %s2267_s4, 32, %s4694_s10, [#allocation3]  }
 0x5d8   :  { %2866 = dma.done.wait [#allocation3], 32  }
 0x5d9   :  { %2867 = vsyncadd [#allocation3], 4294967264 }
 0x5da   :  { %2273 = vsyncpa [#allocation3], 1 }

</bundles_post_ra>
